<compile_context>
chip_gen: v7x
topology: tpu7x:2x2x1
jax: 0.10.0
libtpu: 0.0.40
codegen_flags: <defaults>
</compile_context>

<pallas_src>
import jax
import jax.numpy as jnp
from jax import lax
from jax.experimental import pallas as pl
from jax.experimental.pallas import tpu as pltpu


def _round_up(x, m):
    return (x + m - 1) // m * m


def _make_dlstm_kernel(t_chunk, hp, t_real, t_pad, fold_bias, unroll):
    """Builds the per-(batch-tile, time-chunk) kernel body."""

    def kernel(xw_ref, c0_ref, w0c_ref, w1_ref, b1_ref, hx_ref, cx_ref):
        # cx output block index is constant along the time axis -> it stays
        # resident in VMEM and is the cross-chunk cell-state carry.
        @pl.when(pl.program_id(1) == 0)
        def _():
            cx_ref[...] = c0_ref[...]

        base = pl.program_id(1) * t_chunk  # global step of loop index 0

        def step(s, c):
            # Layer 0 (recurrent half only): relu(xw_t + c @ W0_c).
            # xw may be streamed in bf16; the add / gates / carry stay f32.
            h1 = xw_ref[s].astype(jnp.float32) + jnp.dot(
                c.astype(w0c_ref.dtype), w0c_ref[...],
                preferred_element_type=jnp.float32)
            h1 = jnp.maximum(h1, 0.0)

            # Layer 1: single fused (Hp, 5*Hp) MXU push.  Heads are packed as
            # [cx_a, cx_b, f, i, hx] so the gates feeding the serial c_new
            # dependency drain first; hx (off the critical path) drains last.
            net = jnp.dot(h1.astype(w1_ref.dtype), w1_ref[...],
                          preferred_element_type=jnp.float32)
            if not fold_bias:
                net = net + b1_ref[...]  # (1, 5Hp) bias, broadcast in the add

            cx_a = net[:, 0 * hp:1 * hp]
            cx_b = net[:, 1 * hp:2 * hp]
            f_p = net[:, 2 * hp:3 * hp]
            i_p = net[:, 3 * hp:4 * hp]
            hx_p = net[:, 4 * hp:5 * hp]

            new_cx = jnp.maximum(cx_a, 0.0) - jnp.maximum(cx_b, 0.0)  # drelu
            c_new = jax.nn.sigmoid(i_p) * new_cx + jax.nn.sigmoid(f_p) * c
            if t_pad != t_real:
                # Padded tail steps must not advance the carried cell state.
                c_new = jnp.where(base + s < t_real, c_new, c)

            hx_ref[s] = jnp.maximum(hx_p, 0.0).astype(hx_ref.dtype)
            return c_new

        cx_ref[...] = lax.fori_loop(0, t_chunk, step, cx_ref[...],
                                    unroll=unroll)

    return kernel


def dlstm_forward(x, params, cell_state=None, reset_flags=None, *,
                  t_chunk=32, b_tile=None, weight_dtype=jnp.bfloat16,
                  xw_dtype=None):
    """x: (T, B, I) float32. Returns (hx: (T, B, H), cx: (1, B, H))."""
    if reset_flags is not None:
        # TODO(synk): reset_flags keep-gate masking not implemented in the kernel.
        raise NotImplementedError("reset_flags path is not supported")

    w0, b0, w1, b1 = params       # w0: (I+H, H), b0: (H,), w1: (H, 5H), b1: (5H,)
    T, B, I = x.shape
    H = w0.shape[1]
    w0x, w0c = w0[:I], w0[I:]

    if xw_dtype is None:
        # Stream the hoisted projection at bf16 whenever weights are narrowed.
        xw_dtype = jnp.bfloat16 if weight_dtype != jnp.float32 else jnp.float32

    # --- tile / padding selection ------------------------------------------
    Hp = _round_up(H, 128)
    fold_bias = Hp > H            # spare lane column -> fold b1 into W1 row H

    Bp0 = _round_up(B, 8)
    if b_tile is None:
        b_tile = min(Bp0, 128)    # bound per-matmul rows -> bound vreg pressure
    b_tile = _round_up(max(8, int(b_tile)), 8)
    Bp = _round_up(Bp0, b_tile)

    t_chunk = max(1, min(int(t_chunk), _round_up(T, 8)))
    Tp = _round_up(T, t_chunk)
    if t_chunk % 8 == 0:
        unroll = 8
    elif t_chunk % 4 == 0:
        unroll = 4
    else:
        unroll = True             # small chunk: fully unroll

    # --- padded parameters (padding rows/cols are zero) ---------------------
    w0x_p = jnp.zeros((I, Hp), jnp.float32).at[:, :H].set(w0x.astype(jnp.float32))
    b0_p = jnp.zeros((Hp,), jnp.float32).at[:H].set(b0.astype(jnp.float32))
    if fold_bias:
        # Constant-ones column of h1 at (padded) index H carries the layer-1
        # bias: xw[:, :, H] = 1, W0_c column H = 0, W1 row H = b1.
        b0_p = b0_p.at[H].set(1.0)

    w0c_p = jnp.zeros((Hp, Hp), jnp.float32).at[:H, :H].set(w0c.astype(jnp.float32))

    # Fused W1 / b1, heads reordered to [cx_a, cx_b, f, i, hx] (hx last), each
    # head placed at a lane-aligned offset k*Hp.
    head_order = (0, 1, 3, 4, 2)          # original head index per packed slot
    w1_p = jnp.zeros((Hp, 5 * Hp), jnp.float32)
    b1_p = jnp.zeros((1, 5 * Hp), jnp.float32)
    for slot, oh in enumerate(head_order):
        w_head = w1[:, oh * H:(oh + 1) * H].astype(jnp.float32)
        b_head = b1[oh * H:(oh + 1) * H].astype(jnp.float32)
        w1_p = w1_p.at[:H, slot * Hp:slot * Hp + H].set(w_head)
        if fold_bias:
            w1_p = w1_p.at[H, slot * Hp:slot * Hp + H].set(b_head)
        else:
            b1_p = b1_p.at[0, slot * Hp:slot * Hp + H].set(b_head)

    # Only the MXU operands are narrowed; biases / carry stay f32.
    w0c_p = w0c_p.astype(weight_dtype)
    w1_p = w1_p.astype(weight_dtype)

    # --- hoisted input projection, produced directly in padded layout -------
    x_p = jnp.zeros((Tp, Bp, I), jnp.float32).at[:T, :B, :].set(
        x.astype(jnp.float32))
    xw = (x_p.reshape(Tp * Bp, I) @ w0x_p + b0_p[None, :]).reshape(Tp, Bp, Hp)
    xw_p = xw.astype(xw_dtype)

    if cell_state is None:
        c0 = jnp.zeros((B, H), jnp.float32)
    else:
        c0 = jnp.squeeze(cell_state, axis=0).astype(jnp.float32)
    c0_p = jnp.zeros((Bp, Hp), jnp.float32).at[:B, :H].set(c0)

    # --- VMEM budget: real double-buffered footprint + headroom -------------
    wb = jnp.dtype(weight_dtype).itemsize
    xb = jnp.dtype(xw_dtype).itemsize
    need = (2 * t_chunk * b_tile * Hp * xb          # xw blocks (double buffer)
            + 2 * t_chunk * b_tile * Hp * 4         # hx blocks (double buffer)
            + 2 * (Hp * Hp + Hp * 5 * Hp) * wb      # W0_c + W1
            + 2 * 5 * Hp * 4                        # b1
            + 4 * b_tile * Hp * 4)                  # c0 in + cx out
    vmem_limit = int(need * 1.5) + (8 << 20)
    vmem_limit = max(32 << 20, min(vmem_limit, 64 << 20))   # v7x-safe cap

    grid = (Bp // b_tile, Tp // t_chunk)
    kernel = _make_dlstm_kernel(t_chunk, Hp, T, Tp, fold_bias, unroll)

    hx_full, cx_full = pl.pallas_call(
        kernel,
        grid=grid,
        in_specs=[
            pl.BlockSpec((t_chunk, b_tile, Hp), lambda b, t: (t, b, 0)),  # xw
            pl.BlockSpec((b_tile, Hp), lambda b, t: (b, 0)),              # c0
            pl.BlockSpec((Hp, Hp), lambda b, t: (0, 0)),                  # W0_c
            pl.BlockSpec((Hp, 5 * Hp), lambda b, t: (0, 0)),              # W1 fused
            pl.BlockSpec((1, 5 * Hp), lambda b, t: (0, 0)),               # b1 fused
        ],
        out_specs=[
            pl.BlockSpec((t_chunk, b_tile, Hp), lambda b, t: (t, b, 0)),  # hx chunk
            pl.BlockSpec((b_tile, Hp), lambda b, t: (b, 0)),              # cx carry
        ],
        out_shape=(
            jax.ShapeDtypeStruct((Tp, Bp, Hp), jnp.float32),
            jax.ShapeDtypeStruct((Bp, Hp), jnp.float32),
        ),
        compiler_params=pltpu.CompilerParams(
            dimension_semantics=("parallel", "arbitrary"),
            vmem_limit_bytes=vmem_limit),
    )(xw_p, c0_p, w0c_p, w1_p, b1_p)

    # NOTE: padded rows/steps of hx_full/cx_full are garbage by construction
    # and must never be consumed; they are sliced off here.
    return hx_full[:T, :B, :H], cx_full[None, :B, :H]


def make_params(key, input_size, hidden_size):
    """Deterministic synthetic weights with PyTorch-Linear-like uniform scale."""
    I, H = input_size, hidden_size
    k0, k1, k2, k3 = jax.random.split(key, 4)
    s0 = 1.0 / jnp.sqrt(I + H)
    s1 = 1.0 / jnp.sqrt(H)
    w0 = jax.random.uniform(k0, (I + H, H), jnp.float32, -s0, s0)   # layer 0
    b0 = jax.random.uniform(k1, (H,), jnp.float32, -s0, s0)
    w1 = jax.random.uniform(k2, (H, 5 * H), jnp.float32, -s1, s1)   # layer 1
    b1 = jax.random.uniform(k3, (5 * H,), jnp.float32, -s1, s1)
    return w0, b0, w1, b1


def dlstm_ref(x, params, cell_state=None):
    """Pure-JAX reference matching the PyTorch forward."""
    w0, b0, w1, b1 = params
    T, B, I = x.shape
    H = w0.shape[1]
    w0x, w0c = w0[:I], w0[I:]
    c = (jnp.zeros((B, H), jnp.float32) if cell_state is None
         else jnp.squeeze(cell_state, 0))
    hs = []
    for t in range(T):
        h1 = jnp.maximum(x[t] @ w0x + c @ w0c + b0[None, :], 0.0)
        net = h1 @ w1 + b1[None, :]
        cx_a, cx_b, hx_p, f_p, i_p = [net[:, k * H:(k + 1) * H] for k in range(5)]
        new_cx = jnp.maximum(cx_a, 0.0) - jnp.maximum(cx_b, 0.0)
        new_hx = jnp.maximum(hx_p, 0.0)
        c = jax.nn.sigmoid(i_p) * new_cx + jax.nn.sigmoid(f_p) * c
        hs.append(new_hx)
    return jnp.stack(hs, 0), c[None]


if __name__ == "__main__":
    T, B, I, H = 8, 4, 16, 32
    key = jax.random.PRNGKey(0)
    kx, kp, kp2 = jax.random.split(key, 3)
    x = jax.random.normal(kx, (T, B, I), jnp.float32)
    params = make_params(kp, I, H)

    hx_r, cx_r = dlstm_ref(x, params)

    # 1) f32 MXU operands, divisible time chunk: tight check.
    hx, cx = dlstm_forward(x, params, t_chunk=8, weight_dtype=jnp.float32)
    hx, cx = jax.block_until_ready((hx, cx))
    assert hx.shape == (T, B, H) and cx.shape == (1, B, H)
    assert jnp.allclose(hx, hx_r, atol=1e-4, rtol=1e-4), \
        float(jnp.max(jnp.abs(hx - hx_r)))
    assert jnp.allclose(cx, cx_r, atol=1e-4, rtol=1e-4), \
        float(jnp.max(jnp.abs(cx - cx_r)))

    # 2) f32, non-divisible time chunk: exercises padded-tail masking.
    hx5, cx5 = dlstm_forward(x, params, t_chunk=5, weight_dtype=jnp.float32)
    hx5, cx5 = jax.block_until_ready((hx5, cx5))
    assert jnp.allclose(hx5, hx_r, atol=1e-4, rtol=1e-4), \
        float(jnp.max(jnp.abs(hx5 - hx_r)))
    assert jnp.allclose(cx5, cx_r, atol=1e-4, rtol=1e-4), \
        float(jnp.max(jnp.abs(cx5 - cx_r)))

    # 3) Default path: bf16 MXU operands + bf16 xw stream (looser tolerance).
    hxb, cxb = dlstm_forward(x, params)
    hxb, cxb = jax.block_until_ready((hxb, cxb))
    assert jnp.allclose(hxb, hx_r, atol=5e-2, rtol=5e-2), \
        float(jnp.max(jnp.abs(hxb - hx_r)))
    assert jnp.allclose(cxb, cx_r, atol=5e-2, rtol=5e-2), \
        float(jnp.max(jnp.abs(cxb - cx_r)))

    # 4) H already a multiple of 128 (no spare lane column): exercises the
    #    explicit per-step bias-add branch.
    H2 = 128
    params2 = make_params(kp2, I, H2)
    hx2r, cx2r = dlstm_ref(x, params2)
    hx2, cx2 = dlstm_forward(x, params2, t_chunk=8, weight_dtype=jnp.float32)
    hx2, cx2 = jax.block_until_ready((hx2, cx2))
    assert hx2.shape == (T, B, H2) and cx2.shape == (1, B, H2)
    assert jnp.allclose(hx2, hx2r, atol=5e-3, rtol=5e-3), \
        float(jnp.max(jnp.abs(hx2 - hx2r)))
    assert jnp.allclose(cx2, cx2r, atol=5e-3, rtol=5e-3), \
        float(jnp.max(jnp.abs(cx2 - cx2r)))

    print("KERNEL_OK")
</pallas_src>

<mosaic_0001>
module attributes {stable_mosaic.version = 11 : i64} {
  func.func @kernel(%arg0: i32, %arg1: i32, %arg2: memref<8x8x128xf32, #tpu.memory_space<vmem>>, %arg3: memref<8x128xf32, #tpu.memory_space<vmem>>, %arg4: memref<128x128xf32, #tpu.memory_space<vmem>>, %arg5: memref<128x640xf32, #tpu.memory_space<vmem>>, %arg6: memref<1x640xf32, #tpu.memory_space<vmem>>, %arg7: memref<8x8x128xf32, #tpu.memory_space<vmem>>, %arg8: memref<8x128xf32, #tpu.memory_space<vmem>>) attributes {dimension_semantics = [#tpu.dimension_semantics<parallel>, #tpu.dimension_semantics<arbitrary>], iteration_bounds = array<i64: 1, 1>, scalar_prefetch = 0 : i64, scratch_operands = 0 : i64, tpu.core_type = #tpu.core_type<tc>, window_params = [{transform_indices = @transform_0, window_bounds = array<i64: 8, 8, 128>}, {transform_indices = @transform_1, window_bounds = array<i64: 8, 128>}, {pipeline_mode = #tpu.pipeline_mode<synchronous>, transform_indices = @transform_2, window_bounds = array<i64: 128, 128>}, {pipeline_mode = #tpu.pipeline_mode<synchronous>, transform_indices = @transform_3, window_bounds = array<i64: 128, 640>}, {pipeline_mode = #tpu.pipeline_mode<synchronous>, transform_indices = @transform_4, window_bounds = array<i64: 1, 640>}, {transform_indices = @transform_5, window_bounds = array<i64: 8, 8, 128>}, {transform_indices = @transform_6, window_bounds = array<i64: 8, 128>}]} {
    %c0_i32 = arith.constant 0 : i32
    %0 = arith.cmpi eq, %arg1, %c0_i32 : i32
    %1 = arith.extui %0 : i1 to i32
    %c0_i32_0 = arith.constant 0 : i32
    %2 = arith.cmpi ne, %1, %c0_i32_0 : i32
    scf.if %2 {
      %c0_132 = arith.constant 0 : index
      %c0_133 = arith.constant 0 : index
      %317 = vector.load %arg3[%c0_132, %c0_133] : memref<8x128xf32, #tpu.memory_space<vmem>>, vector<8x128xf32>
      %c0_134 = arith.constant 0 : index
      %c0_135 = arith.constant 0 : index
      %318 = vector.load %arg8[%c0_134, %c0_135] : memref<8x128xf32, #tpu.memory_space<vmem>>, vector<8x128xf32>
      tpu.vector_store %arg8[%c0_134, %c0_135], %317 {strides = array<i32>} : memref<8x128xf32, #tpu.memory_space<vmem>>, vector<8x128xf32>,
    } else {
    }
    %c0 = arith.constant 0 : index
    %c0_1 = arith.constant 0 : index
    %3 = vector.load %arg8[%c0, %c0_1] : memref<8x128xf32, #tpu.memory_space<vmem>>, vector<8x128xf32>
    %c0_i32_2 = arith.constant 0 : i32
    %4 = arith.index_cast %c0_i32_2 : i32 to index
    %c0_3 = arith.constant 0 : index
    %c0_4 = arith.constant 0 : index
    %5 = vector.load %arg2[%4, %c0_3, %c0_4] : memref<8x8x128xf32, #tpu.memory_space<vmem>>, vector<1x8x128xf32>
    %6 = vector.shape_cast %5 : vector<1x8x128xf32> to vector<8x128xf32>
    %c0_5 = arith.constant 0 : index
    %c0_6 = arith.constant 0 : index
    %7 = vector.load %arg4[%c0_5, %c0_6] : memref<128x128xf32, #tpu.memory_space<vmem>>, vector<128x128xf32>
    %cst = arith.constant dense<0.000000e+00> : vector<8x128xf32>
    %8 = tpu.matmul %3, %7, %cst {dimension_numbers = #tpu.dot_dimension_numbers<[1], [0], [0], [1], [0, 0, 1, 1], [], []>} : vector<8x128xf32>, vector<128x128xf32>, vector<8x128xf32> -> vector<8x128xf32>
    %9 = arith.addf %6, %8 : vector<8x128xf32>
    %cst_7 = arith.constant 0.000000e+00 : f32
    %10 = vector.broadcast %cst_7 : f32 to vector<8x128xf32>
    %11 = arith.maximumf %9, %10 : vector<8x128xf32>
    %c0_8 = arith.constant 0 : index
    %c0_9 = arith.constant 0 : index
    %12 = vector.load %arg5[%c0_8, %c0_9] : memref<128x640xf32, #tpu.memory_space<vmem>>, vector<128x640xf32>
    %cst_10 = arith.constant dense<0.000000e+00> : vector<8x640xf32>
    %13 = tpu.matmul %11, %12, %cst_10 {dimension_numbers = #tpu.dot_dimension_numbers<[1], [0], [0], [1], [0, 0, 1, 1], [], []>} : vector<8x128xf32>, vector<128x640xf32>, vector<8x640xf32> -> vector<8x640xf32>
    %14 = vector.extract_strided_slice %13 {offsets = [0, 0], sizes = [8, 128], strides = [1, 1]} : vector<8x640xf32> to vector<8x128xf32>
    %15 = vector.extract_strided_slice %13 {offsets = [0, 128], sizes = [8, 128], strides = [1, 1]} : vector<8x640xf32> to vector<8x128xf32>
    %16 = vector.extract_strided_slice %13 {offsets = [0, 256], sizes = [8, 128], strides = [1, 1]} : vector<8x640xf32> to vector<8x128xf32>
    %17 = vector.extract_strided_slice %13 {offsets = [0, 384], sizes = [8, 128], strides = [1, 1]} : vector<8x640xf32> to vector<8x128xf32>
    %18 = vector.extract_strided_slice %13 {offsets = [0, 512], sizes = [8, 128], strides = [1, 1]} : vector<8x640xf32> to vector<8x128xf32>
    %cst_11 = arith.constant 0.000000e+00 : f32
    %19 = vector.broadcast %cst_11 : f32 to vector<8x128xf32>
    %20 = arith.maximumf %14, %19 : vector<8x128xf32>
    %cst_12 = arith.constant 0.000000e+00 : f32
    %21 = vector.broadcast %cst_12 : f32 to vector<8x128xf32>
    %22 = arith.maximumf %15, %21 : vector<8x128xf32>
    %23 = arith.subf %20, %22 : vector<8x128xf32>
    %24 = arith.negf %17 : vector<8x128xf32>
    %25 = math.exp %24 : vector<8x128xf32>
    %cst_13 = arith.constant 1.000000e+00 : f32
    %26 = vector.broadcast %cst_13 : f32 to vector<8x128xf32>
    %27 = arith.addf %26, %25 : vector<8x128xf32>
    %28 = arith.divf %26, %27 : vector<8x128xf32>
    %29 = arith.mulf %28, %23 : vector<8x128xf32>
    %30 = arith.negf %16 : vector<8x128xf32>
    %31 = math.exp %30 : vector<8x128xf32>
    %cst_14 = arith.constant 1.000000e+00 : f32
    %32 = vector.broadcast %cst_14 : f32 to vector<8x128xf32>
    %33 = arith.addf %32, %31 : vector<8x128xf32>
    %34 = arith.divf %32, %33 : vector<8x128xf32>
    %35 = arith.mulf %34, %3 : vector<8x128xf32>
    %36 = arith.addf %29, %35 : vector<8x128xf32>
    %cst_15 = arith.constant 0.000000e+00 : f32
    %37 = vector.broadcast %cst_15 : f32 to vector<8x128xf32>
    %38 = arith.maximumf %18, %37 : vector<8x128xf32>
    %39 = arith.index_cast %c0_i32_2 : i32 to index
    %c0_16 = arith.constant 0 : index
    %c0_17 = arith.constant 0 : index
    %40 = vector.load %arg7[%39, %c0_16, %c0_17] : memref<8x8x128xf32, #tpu.memory_space<vmem>>, vector<1x8x128xf32>
    %41 = vector.shape_cast %40 : vector<1x8x128xf32> to vector<8x128xf32>
    %42 = vector.shape_cast %38 : vector<8x128xf32> to vector<1x8x128xf32>
    tpu.vector_store %arg7[%39, %c0_16, %c0_17], %42 {strides = array<i32>} : memref<8x8x128xf32, #tpu.memory_space<vmem>>, vector<1x8x128xf32>,
    %c1_i32 = arith.constant 1 : i32
    %43 = arith.index_cast %c1_i32 : i32 to index
    %c0_18 = arith.constant 0 : index
    %c0_19 = arith.constant 0 : index
    %44 = vector.load %arg2[%43, %c0_18, %c0_19] : memref<8x8x128xf32, #tpu.memory_space<vmem>>, vector<1x8x128xf32>
    %45 = vector.shape_cast %44 : vector<1x8x128xf32> to vector<8x128xf32>
    %c0_20 = arith.constant 0 : index
    %c0_21 = arith.constant 0 : index
    %46 = vector.load %arg4[%c0_20, %c0_21] : memref<128x128xf32, #tpu.memory_space<vmem>>, vector<128x128xf32>
    %cst_22 = arith.constant dense<0.000000e+00> : vector<8x128xf32>
    %47 = tpu.matmul %36, %46, %cst_22 {dimension_numbers = #tpu.dot_dimension_numbers<[1], [0], [0], [1], [0, 0, 1, 1], [], []>} : vector<8x128xf32>, vector<128x128xf32>, vector<8x128xf32> -> vector<8x128xf32>
    %48 = arith.addf %45, %47 : vector<8x128xf32>
    %cst_23 = arith.constant 0.000000e+00 : f32
    %49 = vector.broadcast %cst_23 : f32 to vector<8x128xf32>
    %50 = arith.maximumf %48, %49 : vector<8x128xf32>
    %c0_24 = arith.constant 0 : index
    %c0_25 = arith.constant 0 : index
    %51 = vector.load %arg5[%c0_24, %c0_25] : memref<128x640xf32, #tpu.memory_space<vmem>>, vector<128x640xf32>
    %cst_26 = arith.constant dense<0.000000e+00> : vector<8x640xf32>
    %52 = tpu.matmul %50, %51, %cst_26 {dimension_numbers = #tpu.dot_dimension_numbers<[1], [0], [0], [1], [0, 0, 1, 1], [], []>} : vector<8x128xf32>, vector<128x640xf32>, vector<8x640xf32> -> vector<8x640xf32>
    %53 = vector.extract_strided_slice %52 {offsets = [0, 0], sizes = [8, 128], strides = [1, 1]} : vector<8x640xf32> to vector<8x128xf32>
    %54 = vector.extract_strided_slice %52 {offsets = [0, 128], sizes = [8, 128], strides = [1, 1]} : vector<8x640xf32> to vector<8x128xf32>
    %55 = vector.extract_strided_slice %52 {offsets = [0, 256], sizes = [8, 128], strides = [1, 1]} : vector<8x640xf32> to vector<8x128xf32>
    %56 = vector.extract_strided_slice %52 {offsets = [0, 384], sizes = [8, 128], strides = [1, 1]} : vector<8x640xf32> to vector<8x128xf32>
    %57 = vector.extract_strided_slice %52 {offsets = [0, 512], sizes = [8, 128], strides = [1, 1]} : vector<8x640xf32> to vector<8x128xf32>
    %cst_27 = arith.constant 0.000000e+00 : f32
    %58 = vector.broadcast %cst_27 : f32 to vector<8x128xf32>
    %59 = arith.maximumf %53, %58 : vector<8x128xf32>
    %cst_28 = arith.constant 0.000000e+00 : f32
    %60 = vector.broadcast %cst_28 : f32 to vector<8x128xf32>
    %61 = arith.maximumf %54, %60 : vector<8x128xf32>
    %62 = arith.subf %59, %61 : vector<8x128xf32>
    %63 = arith.negf %56 : vector<8x128xf32>
    %64 = math.exp %63 : vector<8x128xf32>
    %cst_29 = arith.constant 1.000000e+00 : f32
    %65 = vector.broadcast %cst_29 : f32 to vector<8x128xf32>
    %66 = arith.addf %65, %64 : vector<8x128xf32>
    %67 = arith.divf %65, %66 : vector<8x128xf32>
    %68 = arith.mulf %67, %62 : vector<8x128xf32>
    %69 = arith.negf %55 : vector<8x128xf32>
    %70 = math.exp %69 : vector<8x128xf32>
    %cst_30 = arith.constant 1.000000e+00 : f32
    %71 = vector.broadcast %cst_30 : f32 to vector<8x128xf32>
    %72 = arith.addf %71, %70 : vector<8x128xf32>
    %73 = arith.divf %71, %72 : vector<8x128xf32>
    %74 = arith.mulf %73, %36 : vector<8x128xf32>
    %75 = arith.addf %68, %74 : vector<8x128xf32>
    %cst_31 = arith.constant 0.000000e+00 : f32
    %76 = vector.broadcast %cst_31 : f32 to vector<8x128xf32>
    %77 = arith.maximumf %57, %76 : vector<8x128xf32>
    %78 = arith.index_cast %c1_i32 : i32 to index
    %c0_32 = arith.constant 0 : index
    %c0_33 = arith.constant 0 : index
    %79 = vector.load %arg7[%78, %c0_32, %c0_33] : memref<8x8x128xf32, #tpu.memory_space<vmem>>, vector<1x8x128xf32>
    %80 = vector.shape_cast %79 : vector<1x8x128xf32> to vector<8x128xf32>
    %81 = vector.shape_cast %77 : vector<8x128xf32> to vector<1x8x128xf32>
    tpu.vector_store %arg7[%78, %c0_32, %c0_33], %81 {strides = array<i32>} : memref<8x8x128xf32, #tpu.memory_space<vmem>>, vector<1x8x128xf32>,
    %c2_i32 = arith.constant 2 : i32
    %82 = arith.index_cast %c2_i32 : i32 to index
    %c0_34 = arith.constant 0 : index
    %c0_35 = arith.constant 0 : index
    %83 = vector.load %arg2[%82, %c0_34, %c0_35] : memref<8x8x128xf32, #tpu.memory_space<vmem>>, vector<1x8x128xf32>
    %84 = vector.shape_cast %83 : vector<1x8x128xf32> to vector<8x128xf32>
    %c0_36 = arith.constant 0 : index
    %c0_37 = arith.constant 0 : index
    %85 = vector.load %arg4[%c0_36, %c0_37] : memref<128x128xf32, #tpu.memory_space<vmem>>, vector<128x128xf32>
    %cst_38 = arith.constant dense<0.000000e+00> : vector<8x128xf32>
    %86 = tpu.matmul %75, %85, %cst_38 {dimension_numbers = #tpu.dot_dimension_numbers<[1], [0], [0], [1], [0, 0, 1, 1], [], []>} : vector<8x128xf32>, vector<128x128xf32>, vector<8x128xf32> -> vector<8x128xf32>
    %87 = arith.addf %84, %86 : vector<8x128xf32>
    %cst_39 = arith.constant 0.000000e+00 : f32
    %88 = vector.broadcast %cst_39 : f32 to vector<8x128xf32>
    %89 = arith.maximumf %87, %88 : vector<8x128xf32>
    %c0_40 = arith.constant 0 : index
    %c0_41 = arith.constant 0 : index
    %90 = vector.load %arg5[%c0_40, %c0_41] : memref<128x640xf32, #tpu.memory_space<vmem>>, vector<128x640xf32>
    %cst_42 = arith.constant dense<0.000000e+00> : vector<8x640xf32>
    %91 = tpu.matmul %89, %90, %cst_42 {dimension_numbers = #tpu.dot_dimension_numbers<[1], [0], [0], [1], [0, 0, 1, 1], [], []>} : vector<8x128xf32>, vector<128x640xf32>, vector<8x640xf32> -> vector<8x640xf32>
    %92 = vector.extract_strided_slice %91 {offsets = [0, 0], sizes = [8, 128], strides = [1, 1]} : vector<8x640xf32> to vector<8x128xf32>
    %93 = vector.extract_strided_slice %91 {offsets = [0, 128], sizes = [8, 128], strides = [1, 1]} : vector<8x640xf32> to vector<8x128xf32>
    %94 = vector.extract_strided_slice %91 {offsets = [0, 256], sizes = [8, 128], strides = [1, 1]} : vector<8x640xf32> to vector<8x128xf32>
    %95 = vector.extract_strided_slice %91 {offsets = [0, 384], sizes = [8, 128], strides = [1, 1]} : vector<8x640xf32> to vector<8x128xf32>
    %96 = vector.extract_strided_slice %91 {offsets = [0, 512], sizes = [8, 128], strides = [1, 1]} : vector<8x640xf32> to vector<8x128xf32>
    %cst_43 = arith.constant 0.000000e+00 : f32
    %97 = vector.broadcast %cst_43 : f32 to vector<8x128xf32>
    %98 = arith.maximumf %92, %97 : vector<8x128xf32>
    %cst_44 = arith.constant 0.000000e+00 : f32
    %99 = vector.broadcast %cst_44 : f32 to vector<8x128xf32>
    %100 = arith.maximumf %93, %99 : vector<8x128xf32>
    %101 = arith.subf %98, %100 : vector<8x128xf32>
    %102 = arith.negf %95 : vector<8x128xf32>
    %103 = math.exp %102 : vector<8x128xf32>
    %cst_45 = arith.constant 1.000000e+00 : f32
    %104 = vector.broadcast %cst_45 : f32 to vector<8x128xf32>
    %105 = arith.addf %104, %103 : vector<8x128xf32>
    %106 = arith.divf %104, %105 : vector<8x128xf32>
    %107 = arith.mulf %106, %101 : vector<8x128xf32>
    %108 = arith.negf %94 : vector<8x128xf32>
    %109 = math.exp %108 : vector<8x128xf32>
    %cst_46 = arith.constant 1.000000e+00 : f32
    %110 = vector.broadcast %cst_46 : f32 to vector<8x128xf32>
    %111 = arith.addf %110, %109 : vector<8x128xf32>
    %112 = arith.divf %110, %111 : vector<8x128xf32>
    %113 = arith.mulf %112, %75 : vector<8x128xf32>
    %114 = arith.addf %107, %113 : vector<8x128xf32>
    %cst_47 = arith.constant 0.000000e+00 : f32
    %115 = vector.broadcast %cst_47 : f32 to vector<8x128xf32>
    %116 = arith.maximumf %96, %115 : vector<8x128xf32>
    %117 = arith.index_cast %c2_i32 : i32 to index
    %c0_48 = arith.constant 0 : index
    %c0_49 = arith.constant 0 : index
    %118 = vector.load %arg7[%117, %c0_48, %c0_49] : memref<8x8x128xf32, #tpu.memory_space<vmem>>, vector<1x8x128xf32>
    %119 = vector.shape_cast %118 : vector<1x8x128xf32> to vector<8x128xf32>
    %120 = vector.shape_cast %116 : vector<8x128xf32> to vector<1x8x128xf32>
    tpu.vector_store %arg7[%117, %c0_48, %c0_49], %120 {strides = array<i32>} : memref<8x8x128xf32, #tpu.memory_space<vmem>>, vector<1x8x128xf32>,
    %c3_i32 = arith.constant 3 : i32
    %121 = arith.index_cast %c3_i32 : i32 to index
    %c0_50 = arith.constant 0 : index
    %c0_51 = arith.constant 0 : index
    %122 = vector.load %arg2[%121, %c0_50, %c0_51] : memref<8x8x128xf32, #tpu.memory_space<vmem>>, vector<1x8x128xf32>
    %123 = vector.shape_cast %122 : vector<1x8x128xf32> to vector<8x128xf32>
    %c0_52 = arith.constant 0 : index
    %c0_53 = arith.constant 0 : index
    %124 = vector.load %arg4[%c0_52, %c0_53] : memref<128x128xf32, #tpu.memory_space<vmem>>, vector<128x128xf32>
    %cst_54 = arith.constant dense<0.000000e+00> : vector<8x128xf32>
    %125 = tpu.matmul %114, %124, %cst_54 {dimension_numbers = #tpu.dot_dimension_numbers<[1], [0], [0], [1], [0, 0, 1, 1], [], []>} : vector<8x128xf32>, vector<128x128xf32>, vector<8x128xf32> -> vector<8x128xf32>
    %126 = arith.addf %123, %125 : vector<8x128xf32>
    %cst_55 = arith.constant 0.000000e+00 : f32
    %127 = vector.broadcast %cst_55 : f32 to vector<8x128xf32>
    %128 = arith.maximumf %126, %127 : vector<8x128xf32>
    %c0_56 = arith.constant 0 : index
    %c0_57 = arith.constant 0 : index
    %129 = vector.load %arg5[%c0_56, %c0_57] : memref<128x640xf32, #tpu.memory_space<vmem>>, vector<128x640xf32>
    %cst_58 = arith.constant dense<0.000000e+00> : vector<8x640xf32>
    %130 = tpu.matmul %128, %129, %cst_58 {dimension_numbers = #tpu.dot_dimension_numbers<[1], [0], [0], [1], [0, 0, 1, 1], [], []>} : vector<8x128xf32>, vector<128x640xf32>, vector<8x640xf32> -> vector<8x640xf32>
    %131 = vector.extract_strided_slice %130 {offsets = [0, 0], sizes = [8, 128], strides = [1, 1]} : vector<8x640xf32> to vector<8x128xf32>
    %132 = vector.extract_strided_slice %130 {offsets = [0, 128], sizes = [8, 128], strides = [1, 1]} : vector<8x640xf32> to vector<8x128xf32>
    %133 = vector.extract_strided_slice %130 {offsets = [0, 256], sizes = [8, 128], strides = [1, 1]} : vector<8x640xf32> to vector<8x128xf32>
    %134 = vector.extract_strided_slice %130 {offsets = [0, 384], sizes = [8, 128], strides = [1, 1]} : vector<8x640xf32> to vector<8x128xf32>
    %135 = vector.extract_strided_slice %130 {offsets = [0, 512], sizes = [8, 128], strides = [1, 1]} : vector<8x640xf32> to vector<8x128xf32>
    %cst_59 = arith.constant 0.000000e+00 : f32
    %136 = vector.broadcast %cst_59 : f32 to vector<8x128xf32>
    %137 = arith.maximumf %131, %136 : vector<8x128xf32>
    %cst_60 = arith.constant 0.000000e+00 : f32
    %138 = vector.broadcast %cst_60 : f32 to vector<8x128xf32>
    %139 = arith.maximumf %132, %138 : vector<8x128xf32>
    %140 = arith.subf %137, %139 : vector<8x128xf32>
    %141 = arith.negf %134 : vector<8x128xf32>
    %142 = math.exp %141 : vector<8x128xf32>
    %cst_61 = arith.constant 1.000000e+00 : f32
    %143 = vector.broadcast %cst_61 : f32 to vector<8x128xf32>
    %144 = arith.addf %143, %142 : vector<8x128xf32>
    %145 = arith.divf %143, %144 : vector<8x128xf32>
    %146 = arith.mulf %145, %140 : vector<8x128xf32>
    %147 = arith.negf %133 : vector<8x128xf32>
    %148 = math.exp %147 : vector<8x128xf32>
    %cst_62 = arith.constant 1.000000e+00 : f32
    %149 = vector.broadcast %cst_62 : f32 to vector<8x128xf32>
    %150 = arith.addf %149, %148 : vector<8x128xf32>
    %151 = arith.divf %149, %150 : vector<8x128xf32>
    %152 = arith.mulf %151, %114 : vector<8x128xf32>
    %153 = arith.addf %146, %152 : vector<8x128xf32>
    %cst_63 = arith.constant 0.000000e+00 : f32
    %154 = vector.broadcast %cst_63 : f32 to vector<8x128xf32>
    %155 = arith.maximumf %135, %154 : vector<8x128xf32>
    %156 = arith.index_cast %c3_i32 : i32 to index
    %c0_64 = arith.constant 0 : index
    %c0_65 = arith.constant 0 : index
    %157 = vector.load %arg7[%156, %c0_64, %c0_65] : memref<8x8x128xf32, #tpu.memory_space<vmem>>, vector<1x8x128xf32>
    %158 = vector.shape_cast %157 : vector<1x8x128xf32> to vector<8x128xf32>
    %159 = vector.shape_cast %155 : vector<8x128xf32> to vector<1x8x128xf32>
    tpu.vector_store %arg7[%156, %c0_64, %c0_65], %159 {strides = array<i32>} : memref<8x8x128xf32, #tpu.memory_space<vmem>>, vector<1x8x128xf32>,
    %c4_i32 = arith.constant 4 : i32
    %160 = arith.index_cast %c4_i32 : i32 to index
    %c0_66 = arith.constant 0 : index
    %c0_67 = arith.constant 0 : index
    %161 = vector.load %arg2[%160, %c0_66, %c0_67] : memref<8x8x128xf32, #tpu.memory_space<vmem>>, vector<1x8x128xf32>
    %162 = vector.shape_cast %161 : vector<1x8x128xf32> to vector<8x128xf32>
    %c0_68 = arith.constant 0 : index
    %c0_69 = arith.constant 0 : index
    %163 = vector.load %arg4[%c0_68, %c0_69] : memref<128x128xf32, #tpu.memory_space<vmem>>, vector<128x128xf32>
    %cst_70 = arith.constant dense<0.000000e+00> : vector<8x128xf32>
    %164 = tpu.matmul %153, %163, %cst_70 {dimension_numbers = #tpu.dot_dimension_numbers<[1], [0], [0], [1], [0, 0, 1, 1], [], []>} : vector<8x128xf32>, vector<128x128xf32>, vector<8x128xf32> -> vector<8x128xf32>
    %165 = arith.addf %162, %164 : vector<8x128xf32>
    %cst_71 = arith.constant 0.000000e+00 : f32
    %166 = vector.broadcast %cst_71 : f32 to vector<8x128xf32>
    %167 = arith.maximumf %165, %166 : vector<8x128xf32>
    %c0_72 = arith.constant 0 : index
    %c0_73 = arith.constant 0 : index
    %168 = vector.load %arg5[%c0_72, %c0_73] : memref<128x640xf32, #tpu.memory_space<vmem>>, vector<128x640xf32>
    %cst_74 = arith.constant dense<0.000000e+00> : vector<8x640xf32>
    %169 = tpu.matmul %167, %168, %cst_74 {dimension_numbers = #tpu.dot_dimension_numbers<[1], [0], [0], [1], [0, 0, 1, 1], [], []>} : vector<8x128xf32>, vector<128x640xf32>, vector<8x640xf32> -> vector<8x640xf32>
    %170 = vector.extract_strided_slice %169 {offsets = [0, 0], sizes = [8, 128], strides = [1, 1]} : vector<8x640xf32> to vector<8x128xf32>
    %171 = vector.extract_strided_slice %169 {offsets = [0, 128], sizes = [8, 128], strides = [1, 1]} : vector<8x640xf32> to vector<8x128xf32>
    %172 = vector.extract_strided_slice %169 {offsets = [0, 256], sizes = [8, 128], strides = [1, 1]} : vector<8x640xf32> to vector<8x128xf32>
    %173 = vector.extract_strided_slice %169 {offsets = [0, 384], sizes = [8, 128], strides = [1, 1]} : vector<8x640xf32> to vector<8x128xf32>
    %174 = vector.extract_strided_slice %169 {offsets = [0, 512], sizes = [8, 128], strides = [1, 1]} : vector<8x640xf32> to vector<8x128xf32>
    %cst_75 = arith.constant 0.000000e+00 : f32
    %175 = vector.broadcast %cst_75 : f32 to vector<8x128xf32>
    %176 = arith.maximumf %170, %175 : vector<8x128xf32>
    %cst_76 = arith.constant 0.000000e+00 : f32
    %177 = vector.broadcast %cst_76 : f32 to vector<8x128xf32>
    %178 = arith.maximumf %171, %177 : vector<8x128xf32>
    %179 = arith.subf %176, %178 : vector<8x128xf32>
    %180 = arith.negf %173 : vector<8x128xf32>
    %181 = math.exp %180 : vector<8x128xf32>
    %cst_77 = arith.constant 1.000000e+00 : f32
    %182 = vector.broadcast %cst_77 : f32 to vector<8x128xf32>
    %183 = arith.addf %182, %181 : vector<8x128xf32>
    %184 = arith.divf %182, %183 : vector<8x128xf32>
    %185 = arith.mulf %184, %179 : vector<8x128xf32>
    %186 = arith.negf %172 : vector<8x128xf32>
    %187 = math.exp %186 : vector<8x128xf32>
    %cst_78 = arith.constant 1.000000e+00 : f32
    %188 = vector.broadcast %cst_78 : f32 to vector<8x128xf32>
    %189 = arith.addf %188, %187 : vector<8x128xf32>
    %190 = arith.divf %188, %189 : vector<8x128xf32>
    %191 = arith.mulf %190, %153 : vector<8x128xf32>
    %192 = arith.addf %185, %191 : vector<8x128xf32>
    %cst_79 = arith.constant 0.000000e+00 : f32
    %193 = vector.broadcast %cst_79 : f32 to vector<8x128xf32>
    %194 = arith.maximumf %174, %193 : vector<8x128xf32>
    %195 = arith.index_cast %c4_i32 : i32 to index
    %c0_80 = arith.constant 0 : index
    %c0_81 = arith.constant 0 : index
    %196 = vector.load %arg7[%195, %c0_80, %c0_81] : memref<8x8x128xf32, #tpu.memory_space<vmem>>, vector<1x8x128xf32>
    %197 = vector.shape_cast %196 : vector<1x8x128xf32> to vector<8x128xf32>
    %198 = vector.shape_cast %194 : vector<8x128xf32> to vector<1x8x128xf32>
    tpu.vector_store %arg7[%195, %c0_80, %c0_81], %198 {strides = array<i32>} : memref<8x8x128xf32, #tpu.memory_space<vmem>>, vector<1x8x128xf32>,
    %c5_i32 = arith.constant 5 : i32
    %199 = arith.index_cast %c5_i32 : i32 to index
    %c0_82 = arith.constant 0 : index
    %c0_83 = arith.constant 0 : index
    %200 = vector.load %arg2[%199, %c0_82, %c0_83] : memref<8x8x128xf32, #tpu.memory_space<vmem>>, vector<1x8x128xf32>
    %201 = vector.shape_cast %200 : vector<1x8x128xf32> to vector<8x128xf32>
    %c0_84 = arith.constant 0 : index
    %c0_85 = arith.constant 0 : index
    %202 = vector.load %arg4[%c0_84, %c0_85] : memref<128x128xf32, #tpu.memory_space<vmem>>, vector<128x128xf32>
    %cst_86 = arith.constant dense<0.000000e+00> : vector<8x128xf32>
    %203 = tpu.matmul %192, %202, %cst_86 {dimension_numbers = #tpu.dot_dimension_numbers<[1], [0], [0], [1], [0, 0, 1, 1], [], []>} : vector<8x128xf32>, vector<128x128xf32>, vector<8x128xf32> -> vector<8x128xf32>
    %204 = arith.addf %201, %203 : vector<8x128xf32>
    %cst_87 = arith.constant 0.000000e+00 : f32
    %205 = vector.broadcast %cst_87 : f32 to vector<8x128xf32>
    %206 = arith.maximumf %204, %205 : vector<8x128xf32>
    %c0_88 = arith.constant 0 : index
    %c0_89 = arith.constant 0 : index
    %207 = vector.load %arg5[%c0_88, %c0_89] : memref<128x640xf32, #tpu.memory_space<vmem>>, vector<128x640xf32>
    %cst_90 = arith.constant dense<0.000000e+00> : vector<8x640xf32>
    %208 = tpu.matmul %206, %207, %cst_90 {dimension_numbers = #tpu.dot_dimension_numbers<[1], [0], [0], [1], [0, 0, 1, 1], [], []>} : vector<8x128xf32>, vector<128x640xf32>, vector<8x640xf32> -> vector<8x640xf32>
    %209 = vector.extract_strided_slice %208 {offsets = [0, 0], sizes = [8, 128], strides = [1, 1]} : vector<8x640xf32> to vector<8x128xf32>
    %210 = vector.extract_strided_slice %208 {offsets = [0, 128], sizes = [8, 128], strides = [1, 1]} : vector<8x640xf32> to vector<8x128xf32>
    %211 = vector.extract_strided_slice %208 {offsets = [0, 256], sizes = [8, 128], strides = [1, 1]} : vector<8x640xf32> to vector<8x128xf32>
    %212 = vector.extract_strided_slice %208 {offsets = [0, 384], sizes = [8, 128], strides = [1, 1]} : vector<8x640xf32> to vector<8x128xf32>
    %213 = vector.extract_strided_slice %208 {offsets = [0, 512], sizes = [8, 128], strides = [1, 1]} : vector<8x640xf32> to vector<8x128xf32>
    %cst_91 = arith.constant 0.000000e+00 : f32
    %214 = vector.broadcast %cst_91 : f32 to vector<8x128xf32>
    %215 = arith.maximumf %209, %214 : vector<8x128xf32>
    %cst_92 = arith.constant 0.000000e+00 : f32
    %216 = vector.broadcast %cst_92 : f32 to vector<8x128xf32>
    %217 = arith.maximumf %210, %216 : vector<8x128xf32>
    %218 = arith.subf %215, %217 : vector<8x128xf32>
    %219 = arith.negf %212 : vector<8x128xf32>
    %220 = math.exp %219 : vector<8x128xf32>
    %cst_93 = arith.constant 1.000000e+00 : f32
    %221 = vector.broadcast %cst_93 : f32 to vector<8x128xf32>
    %222 = arith.addf %221, %220 : vector<8x128xf32>
    %223 = arith.divf %221, %222 : vector<8x128xf32>
    %224 = arith.mulf %223, %218 : vector<8x128xf32>
    %225 = arith.negf %211 : vector<8x128xf32>
    %226 = math.exp %225 : vector<8x128xf32>
    %cst_94 = arith.constant 1.000000e+00 : f32
    %227 = vector.broadcast %cst_94 : f32 to vector<8x128xf32>
    %228 = arith.addf %227, %226 : vector<8x128xf32>
    %229 = arith.divf %227, %228 : vector<8x128xf32>
    %230 = arith.mulf %229, %192 : vector<8x128xf32>
    %231 = arith.addf %224, %230 : vector<8x128xf32>
    %cst_95 = arith.constant 0.000000e+00 : f32
    %232 = vector.broadcast %cst_95 : f32 to vector<8x128xf32>
    %233 = arith.maximumf %213, %232 : vector<8x128xf32>
    %234 = arith.index_cast %c5_i32 : i32 to index
    %c0_96 = arith.constant 0 : index
    %c0_97 = arith.constant 0 : index
    %235 = vector.load %arg7[%234, %c0_96, %c0_97] : memref<8x8x128xf32, #tpu.memory_space<vmem>>, vector<1x8x128xf32>
    %236 = vector.shape_cast %235 : vector<1x8x128xf32> to vector<8x128xf32>
    %237 = vector.shape_cast %233 : vector<8x128xf32> to vector<1x8x128xf32>
    tpu.vector_store %arg7[%234, %c0_96, %c0_97], %237 {strides = array<i32>} : memref<8x8x128xf32, #tpu.memory_space<vmem>>, vector<1x8x128xf32>,
    %c6_i32 = arith.constant 6 : i32
    %238 = arith.index_cast %c6_i32 : i32 to index
    %c0_98 = arith.constant 0 : index
    %c0_99 = arith.constant 0 : index
    %239 = vector.load %arg2[%238, %c0_98, %c0_99] : memref<8x8x128xf32, #tpu.memory_space<vmem>>, vector<1x8x128xf32>
    %240 = vector.shape_cast %239 : vector<1x8x128xf32> to vector<8x128xf32>
    %c0_100 = arith.constant 0 : index
    %c0_101 = arith.constant 0 : index
    %241 = vector.load %arg4[%c0_100, %c0_101] : memref<128x128xf32, #tpu.memory_space<vmem>>, vector<128x128xf32>
    %cst_102 = arith.constant dense<0.000000e+00> : vector<8x128xf32>
    %242 = tpu.matmul %231, %241, %cst_102 {dimension_numbers = #tpu.dot_dimension_numbers<[1], [0], [0], [1], [0, 0, 1, 1], [], []>} : vector<8x128xf32>, vector<128x128xf32>, vector<8x128xf32> -> vector<8x128xf32>
    %243 = arith.addf %240, %242 : vector<8x128xf32>
    %cst_103 = arith.constant 0.000000e+00 : f32
    %244 = vector.broadcast %cst_103 : f32 to vector<8x128xf32>
    %245 = arith.maximumf %243, %244 : vector<8x128xf32>
    %c0_104 = arith.constant 0 : index
    %c0_105 = arith.constant 0 : index
    %246 = vector.load %arg5[%c0_104, %c0_105] : memref<128x640xf32, #tpu.memory_space<vmem>>, vector<128x640xf32>
    %cst_106 = arith.constant dense<0.000000e+00> : vector<8x640xf32>
    %247 = tpu.matmul %245, %246, %cst_106 {dimension_numbers = #tpu.dot_dimension_numbers<[1], [0], [0], [1], [0, 0, 1, 1], [], []>} : vector<8x128xf32>, vector<128x640xf32>, vector<8x640xf32> -> vector<8x640xf32>
    %248 = vector.extract_strided_slice %247 {offsets = [0, 0], sizes = [8, 128], strides = [1, 1]} : vector<8x640xf32> to vector<8x128xf32>
    %249 = vector.extract_strided_slice %247 {offsets = [0, 128], sizes = [8, 128], strides = [1, 1]} : vector<8x640xf32> to vector<8x128xf32>
    %250 = vector.extract_strided_slice %247 {offsets = [0, 256], sizes = [8, 128], strides = [1, 1]} : vector<8x640xf32> to vector<8x128xf32>
    %251 = vector.extract_strided_slice %247 {offsets = [0, 384], sizes = [8, 128], strides = [1, 1]} : vector<8x640xf32> to vector<8x128xf32>
    %252 = vector.extract_strided_slice %247 {offsets = [0, 512], sizes = [8, 128], strides = [1, 1]} : vector<8x640xf32> to vector<8x128xf32>
    %cst_107 = arith.constant 0.000000e+00 : f32
    %253 = vector.broadcast %cst_107 : f32 to vector<8x128xf32>
    %254 = arith.maximumf %248, %253 : vector<8x128xf32>
    %cst_108 = arith.constant 0.000000e+00 : f32
    %255 = vector.broadcast %cst_108 : f32 to vector<8x128xf32>
    %256 = arith.maximumf %249, %255 : vector<8x128xf32>
    %257 = arith.subf %254, %256 : vector<8x128xf32>
    %258 = arith.negf %251 : vector<8x128xf32>
    %259 = math.exp %258 : vector<8x128xf32>
    %cst_109 = arith.constant 1.000000e+00 : f32
    %260 = vector.broadcast %cst_109 : f32 to vector<8x128xf32>
    %261 = arith.addf %260, %259 : vector<8x128xf32>
    %262 = arith.divf %260, %261 : vector<8x128xf32>
    %263 = arith.mulf %262, %257 : vector<8x128xf32>
    %264 = arith.negf %250 : vector<8x128xf32>
    %265 = math.exp %264 : vector<8x128xf32>
    %cst_110 = arith.constant 1.000000e+00 : f32
    %266 = vector.broadcast %cst_110 : f32 to vector<8x128xf32>
    %267 = arith.addf %266, %265 : vector<8x128xf32>
    %268 = arith.divf %266, %267 : vector<8x128xf32>
    %269 = arith.mulf %268, %231 : vector<8x128xf32>
    %270 = arith.addf %263, %269 : vector<8x128xf32>
    %cst_111 = arith.constant 0.000000e+00 : f32
    %271 = vector.broadcast %cst_111 : f32 to vector<8x128xf32>
    %272 = arith.maximumf %252, %271 : vector<8x128xf32>
    %273 = arith.index_cast %c6_i32 : i32 to index
    %c0_112 = arith.constant 0 : index
    %c0_113 = arith.constant 0 : index
    %274 = vector.load %arg7[%273, %c0_112, %c0_113] : memref<8x8x128xf32, #tpu.memory_space<vmem>>, vector<1x8x128xf32>
    %275 = vector.shape_cast %274 : vector<1x8x128xf32> to vector<8x128xf32>
    %276 = vector.shape_cast %272 : vector<8x128xf32> to vector<1x8x128xf32>
    tpu.vector_store %arg7[%273, %c0_112, %c0_113], %276 {strides = array<i32>} : memref<8x8x128xf32, #tpu.memory_space<vmem>>, vector<1x8x128xf32>,
    %c7_i32 = arith.constant 7 : i32
    %277 = arith.index_cast %c7_i32 : i32 to index
    %c0_114 = arith.constant 0 : index
    %c0_115 = arith.constant 0 : index
    %278 = vector.load %arg2[%277, %c0_114, %c0_115] : memref<8x8x128xf32, #tpu.memory_space<vmem>>, vector<1x8x128xf32>
    %279 = vector.shape_cast %278 : vector<1x8x128xf32> to vector<8x128xf32>
    %c0_116 = arith.constant 0 : index
    %c0_117 = arith.constant 0 : index
    %280 = vector.load %arg4[%c0_116, %c0_117] : memref<128x128xf32, #tpu.memory_space<vmem>>, vector<128x128xf32>
    %cst_118 = arith.constant dense<0.000000e+00> : vector<8x128xf32>
    %281 = tpu.matmul %270, %280, %cst_118 {dimension_numbers = #tpu.dot_dimension_numbers<[1], [0], [0], [1], [0, 0, 1, 1], [], []>} : vector<8x128xf32>, vector<128x128xf32>, vector<8x128xf32> -> vector<8x128xf32>
    %282 = arith.addf %279, %281 : vector<8x128xf32>
    %cst_119 = arith.constant 0.000000e+00 : f32
    %283 = vector.broadcast %cst_119 : f32 to vector<8x128xf32>
    %284 = arith.maximumf %282, %283 : vector<8x128xf32>
    %c0_120 = arith.constant 0 : index
    %c0_121 = arith.constant 0 : index
    %285 = vector.load %arg5[%c0_120, %c0_121] : memref<128x640xf32, #tpu.memory_space<vmem>>, vector<128x640xf32>
    %cst_122 = arith.constant dense<0.000000e+00> : vector<8x640xf32>
    %286 = tpu.matmul %284, %285, %cst_122 {dimension_numbers = #tpu.dot_dimension_numbers<[1], [0], [0], [1], [0, 0, 1, 1], [], []>} : vector<8x128xf32>, vector<128x640xf32>, vector<8x640xf32> -> vector<8x640xf32>
    %287 = vector.extract_strided_slice %286 {offsets = [0, 0], sizes = [8, 128], strides = [1, 1]} : vector<8x640xf32> to vector<8x128xf32>
    %288 = vector.extract_strided_slice %286 {offsets = [0, 128], sizes = [8, 128], strides = [1, 1]} : vector<8x640xf32> to vector<8x128xf32>
    %289 = vector.extract_strided_slice %286 {offsets = [0, 256], sizes = [8, 128], strides = [1, 1]} : vector<8x640xf32> to vector<8x128xf32>
    %290 = vector.extract_strided_slice %286 {offsets = [0, 384], sizes = [8, 128], strides = [1, 1]} : vector<8x640xf32> to vector<8x128xf32>
    %291 = vector.extract_strided_slice %286 {offsets = [0, 512], sizes = [8, 128], strides = [1, 1]} : vector<8x640xf32> to vector<8x128xf32>
    %cst_123 = arith.constant 0.000000e+00 : f32
    %292 = vector.broadcast %cst_123 : f32 to vector<8x128xf32>
    %293 = arith.maximumf %287, %292 : vector<8x128xf32>
    %cst_124 = arith.constant 0.000000e+00 : f32
    %294 = vector.broadcast %cst_124 : f32 to vector<8x128xf32>
    %295 = arith.maximumf %288, %294 : vector<8x128xf32>
    %296 = arith.subf %293, %295 : vector<8x128xf32>
    %297 = arith.negf %290 : vector<8x128xf32>
    %298 = math.exp %297 : vector<8x128xf32>
    %cst_125 = arith.constant 1.000000e+00 : f32
    %299 = vector.broadcast %cst_125 : f32 to vector<8x128xf32>
    %300 = arith.addf %299, %298 : vector<8x128xf32>
    %301 = arith.divf %299, %300 : vector<8x128xf32>
    %302 = arith.mulf %301, %296 : vector<8x128xf32>
    %303 = arith.negf %289 : vector<8x128xf32>
    %304 = math.exp %303 : vector<8x128xf32>
    %cst_126 = arith.constant 1.000000e+00 : f32
    %305 = vector.broadcast %cst_126 : f32 to vector<8x128xf32>
    %306 = arith.addf %305, %304 : vector<8x128xf32>
    %307 = arith.divf %305, %306 : vector<8x128xf32>
    %308 = arith.mulf %307, %270 : vector<8x128xf32>
    %309 = arith.addf %302, %308 : vector<8x128xf32>
    %cst_127 = arith.constant 0.000000e+00 : f32
    %310 = vector.broadcast %cst_127 : f32 to vector<8x128xf32>
    %311 = arith.maximumf %291, %310 : vector<8x128xf32>
    %312 = arith.index_cast %c7_i32 : i32 to index
    %c0_128 = arith.constant 0 : index
    %c0_129 = arith.constant 0 : index
    %313 = vector.load %arg7[%312, %c0_128, %c0_129] : memref<8x8x128xf32, #tpu.memory_space<vmem>>, vector<1x8x128xf32>
    %314 = vector.shape_cast %313 : vector<1x8x128xf32> to vector<8x128xf32>
    %315 = vector.shape_cast %311 : vector<8x128xf32> to vector<1x8x128xf32>
    tpu.vector_store %arg7[%312, %c0_128, %c0_129], %315 {strides = array<i32>} : memref<8x8x128xf32, #tpu.memory_space<vmem>>, vector<1x8x128xf32>,
    %c8_i32 = arith.constant 8 : i32
    %c0_130 = arith.constant 0 : index
    %c0_131 = arith.constant 0 : index
    %316 = vector.load %arg8[%c0_130, %c0_131] : memref<8x128xf32, #tpu.memory_space<vmem>>, vector<8x128xf32>
    tpu.vector_store %arg8[%c0_130, %c0_131], %309 {strides = array<i32>} : memref<8x128xf32, #tpu.memory_space<vmem>>, vector<8x128xf32>,
    return
  }
  func.func @transform_0(%arg0: i32, %arg1: i32) -> (i32, i32, i32) {
    %c0_i32 = arith.constant 0 : i32
    %c0_i32_0 = arith.constant 0 : i32
    return %arg1, %arg0, %c0_i32 : i32, i32, i32
  }
  func.func @transform_1(%arg0: i32, %arg1: i32) -> (i32, i32) {
    %c0_i32 = arith.constant 0 : i32
    %c0_i32_0 = arith.constant 0 : i32
    return %arg0, %c0_i32 : i32, i32
  }
  func.func @transform_2(%arg0: i32, %arg1: i32) -> (i32, i32) {
    %c0_i32 = arith.constant 0 : i32
    %c0_i32_0 = arith.constant 0 : i32
    %c0_i32_1 = arith.constant 0 : i32
    return %c0_i32, %c0_i32_0 : i32, i32
  }
  func.func @transform_3(%arg0: i32, %arg1: i32) -> (i32, i32) {
    %c0_i32 = arith.constant 0 : i32
    %c0_i32_0 = arith.constant 0 : i32
    %c0_i32_1 = arith.constant 0 : i32
    return %c0_i32, %c0_i32_0 : i32, i32
  }
  func.func @transform_4(%arg0: i32, %arg1: i32) -> (i32, i32) {
    %c0_i32 = arith.constant 0 : i32
    %c0_i32_0 = arith.constant 0 : i32
    %c0_i32_1 = arith.constant 0 : i32
    return %c0_i32, %c0_i32_0 : i32, i32
  }
  func.func @transform_5(%arg0: i32, %arg1: i32) -> (i32, i32, i32) {
    %c0_i32 = arith.constant 0 : i32
    %c0_i32_0 = arith.constant 0 : i32
    return %arg1, %arg0, %c0_i32 : i32, i32, i32
  }
  func.func @transform_6(%arg0: i32, %arg1: i32) -> (i32, i32) {
    %c0_i32 = arith.constant 0 : i32
    %c0_i32_0 = arith.constant 0 : i32
    return %arg0, %c0_i32 : i32, i32
  }
}

</mosaic_0001>

<bundles_post_ra>
// kernel: tpu_custom_call.1
= control target key start
LH: loop header
LB: loop body
LE: loop exit
PB: predicated region body
PF: predicated region fallthrough
CT: control target
= control target key end

     0   :  { %12 = vsyncpa [#allocation3], 0  ;;  %s6333_s0 = inlined_call_operand.hbm [shape: f32[8,8,128], index: 0, kind: input, shape index: {}]   ;;  %s6334_s1 = inlined_call_operand.hbm [shape: f32[8,128], index: 1, kind: input, shape index: {}]   ;;  %s6335_s2 = inlined_call_operand.hbm [shape: f32[128,128], index: 2, kind: input, shape index: {}]   ;;  %s6336_s3 = inlined_call_operand.hbm [shape: f32[128,640], index: 3, kind: input, shape index: {}]   ;;  %s6337_s4 = inlined_call_operand.vmem [shape: f32[1,640], index: 4, kind: input, shape index: {}]   ;;  %s6338_s5 = inlined_call_operand.hbm [shape: f32[8,8,128], index: 5, kind: output, shape index: {0}]   ;;  %s6339_s6 = inlined_call_operand.hbm [shape: f32[8,128], index: 6, kind: output, shape index: {1}]  }
   0x1   :  { %13 = vsyncpa [#allocation6], 0 }
   0x2   :  { %14 = vsyncpa [#allocation9], 0 }
   0x3   :  { %15 = vsyncpa [#allocation4], 0 }
   0x4   :  { %16 = vsyncpa [#allocation12], 0  ;;  %s5303_s21 = smov [#allocation5]   ;;  %s5304_s23 = smov [#allocation2]  }
   0x5   :  { %s35_s22 = sshll.u32 %s5303_s21, 4  ;;  %s22_s24 = sshll.u32 %s5304_s23, 4  ;;  %s36_s22 = int_to_ptr.vmem [resolvable:$true] %s35_s22  ;;  %s5351_s24 = int_to_ptr.vmem [resolvable:$true] %s22_s24 }
   0x6   :  { %s5161_s26 = scalar_lea.hbm %s6334_s1, 128 }
   0x7   :  { %p5162_p0 = scmp.ne.s32.totalorder %s6334_s1, %s5161_s26  ;;  %p5165_p1 = scmp.lt.u32.totalorder %s5161_s26, %s6334_s1 }
   0x9   :  { %p5167_p2 = pnand %p5165_p1, %p5162_p0 }
   0xb   :  { %5170 = shalt.err (!%p5167_p2)
}
   0xc   :  { %s5171_s7 = scalar_lea.vmem %s36_s22, 128  ;;  %p5176_p4 = scmp.lt.s32.totalorder %s36_s22, %s36_s22 }
   0xd   :  { %p5172_p3 = scmp.ne.s32.totalorder %s36_s22, %s5171_s7  ;;  %p5177_p5 = scmp.lt.s32.totalorder %s5171_s7, %s5171_s7 }
   0xf   :  { %p5178_p6 = por %p5177_p5, %p5176_p4 }
  0x11   :  { %p5179_p7 = pnand %p5178_p6, %p5172_p3 }
  0x13   :  { %5182 = shalt.err (!%p5179_p7)
}
  0x14   :  { %38 = dma.hbm_to_vmem [thread:$0]  %s6334_s1, 128, %s36_s22, [#allocation6]  }
  0x15   :  { %s5183_s12 = scalar_lea.hbm %s6333_s0, 1024 }
  0x16   :  { %p5184_p8 = scmp.ne.s32.totalorder %s6333_s0, %s5183_s12  ;;  %p5187_p9 = scmp.lt.u32.totalorder %s5183_s12, %s6333_s0 }
  0x18   :  { %p5189_p10 = pnand %p5187_p9, %p5184_p8 }
  0x1a   :  { %5192 = shalt.err (!%p5189_p10)
}
  0x1b   :  { %s5193_s17 = scalar_lea.vmem %s5351_s24, 1024  ;;  %p5198_p12 = scmp.lt.s32.totalorder %s5351_s24, %s5351_s24 }
  0x1c   :  { %p5194_p11 = scmp.ne.s32.totalorder %s5351_s24, %s5193_s17  ;;  %p5199_p13 = scmp.lt.s32.totalorder %s5193_s17, %s5193_s17 }
  0x1e   :  { %p5200_p0 = por %p5199_p13, %p5198_p12 }
  0x20   :  { %p5201_p1 = pnand %p5200_p0, %p5194_p11 }
  0x22   :  { %5204 = shalt.err (!%p5201_p1)
}
  0x23   :  { %s5305_s1 = smov 128   ;;  %s5306_s18 = smov 8  }
  0x24   :  { %28 = dma.hbm_to_vmem [thread:$0]  %s6333_s0, 1024, %s5351_s24, [#allocation3], %s5305_s1, %s5305_s1, %s5306_s18  }
  0x25   :  { %s5307_s21 = smov [#allocation7]   ;;  %s5308_s23 = smov [#allocation8]  }
  0x26   :  { %s44_s22 = sshll.u32 %s5307_s21, 4  ;;  %s56_s25 = sshll.u32 %s5308_s23, 4  ;;  %s45_s22 = int_to_ptr.vmem [resolvable:$true] %s44_s22  ;;  %s5385_s25 = int_to_ptr.vmem [resolvable:$true] %s56_s25 }
  0x27   :  { %s5205_s27 = scalar_lea.hbm %s6335_s2, 2048 }
  0x28   :  { %p5206_p2 = scmp.ne.s32.totalorder %s6335_s2, %s5205_s27  ;;  %p5209_p3 = scmp.lt.u32.totalorder %s5205_s27, %s6335_s2 }
  0x2a   :  { %p5211_p4 = pnand %p5209_p3, %p5206_p2 }
  0x2c   :  { %5214 = shalt.err (!%p5211_p4)
}
  0x2d   :  { %s5215_s0 = scalar_lea.vmem %s45_s22, 2048  ;;  %p5220_p6 = scmp.lt.s32.totalorder %s45_s22, %s45_s22 }
  0x2e   :  { %p5216_p5 = scmp.ne.s32.totalorder %s45_s22, %s5215_s0  ;;  %p5221_p7 = scmp.lt.s32.totalorder %s5215_s0, %s5215_s0 }
  0x30   :  { %p5222_p8 = por %p5221_p7, %p5220_p6 }
  0x32   :  { %p5223_p9 = pnand %p5222_p8, %p5216_p5 }
  0x34   :  { %5226 = shalt.err (!%p5223_p9)
}
  0x35   :  { %50 = dma.hbm_to_vmem [thread:$0]  %s6335_s2, 2048, %s45_s22, [#allocation6], %s5305_s1, %s5305_s1, %s5306_s18  }
  0x36   :  { %s5227_s11 = scalar_lea.hbm %s6336_s3, 10240 }
  0x37   :  { %p5228_p10 = scmp.ne.s32.totalorder %s6336_s3, %s5227_s11  ;;  %p5231_p11 = scmp.lt.u32.totalorder %s5227_s11, %s6336_s3 }
  0x39   :  { %p5233_p12 = pnand %p5231_p11, %p5228_p10 }
  0x3b   :  { %5236 = shalt.err (!%p5233_p12)
}
  0x3c   :  { %s5237_s16 = scalar_lea.vmem %s5385_s25, 10240  ;;  %p5242_p0 = scmp.lt.s32.totalorder %s5385_s25, %s5385_s25 }
  0x3d   :  { %p5238_p13 = scmp.ne.s32.totalorder %s5385_s25, %s5237_s16  ;;  %p5243_p1 = scmp.lt.s32.totalorder %s5237_s16, %s5237_s16 }
  0x3f   :  { %p5244_p2 = por %p5243_p1, %p5242_p0 }
  0x41   :  { %p5245_p3 = pnand %p5244_p2, %p5238_p13 }
  0x43   :  { %5248 = shalt.err (!%p5245_p3)
}
  0x44   :  { %s5309_s2 = smov 640   ;;  %s5310_s17 = smov 40  }
  0x45   :  { %62 = dma.hbm_to_vmem [thread:$0]  %s6336_s3, 10240, %s5385_s25, [#allocation9], %s5309_s2, %s5309_s2, %s5310_s17  }
  0x46   :  { %5293 = dma.done.wait [#allocation3], 1024  }
  0x47   :  { %5294 = vsyncadd [#allocation3], 4294966272 }
  0x48   :  { %5295 = dma.done.wait [#allocation6], 2176  }
  0x49   :  { %5296 = vsyncadd [#allocation6], 4294965120 }
  0x4a   :  { %5297 = dma.done.wait [#allocation9], 10240  }
  0x4b   :  { %5298 = vsyncadd [#allocation9], 4294957056  ;;  %v6343_v0 = vmov 0.0|0.0   ;;  %vm5312_vm0 = vmmov 0   ;;  %v6340_v1 = vmov 0.0   ;;  %v85_v2 = vld [vmem:[#allocation7] sm:$0xff] }
  0x4c   :  { %4188 = vmatprep.subr.bf16.mxu0 %v6343_v0  ;;  %3660 = vmatprep.mubr.msk.f32.mxu0 %vm5312_vm0, %v6340_v1  ;;  %v86_v3 = vld [vmem:[#allocation7 + $0x8] sm:$0xff]  ;;  %v87_v4 = vld [vmem:[#allocation7 + $0x10] sm:$0xff]  ;;  %v88_v6 = vld [vmem:[#allocation7 + $0x18] sm:$0xff]  ;;  %s5314_s3 = smov [#allocation11]   ;;  %s5315_s22 = smov [#allocation10]  }
  0x4d   :  { %317 = vmatprep.mubr.f32.mxu1 %v6340_v1  ;;  %v5423_v5 = vpack.c.bf16 %v86_v3, %v85_v2  ;;  %v5426_v7 = vpack.c.bf16 %v88_v6, %v87_v4  ;;  %v89_v8 = vld [vmem:[#allocation7 + $0x20] sm:$0xff]  ;;  %v90_v9 = vld [vmem:[#allocation7 + $0x28] sm:$0xff]  ;;  %v179_v11 = vld [vmem:[#allocation8 + $0x30] sm:$0xff]  ;;  %s3325_s21 = sshll.u32 %s5314_s3, 4  ;;  %s3312_s23 = sshll.u32 %s5315_s22, 4  ;;  %s3326_s21 = int_to_ptr.vmem [resolvable:$true] %s3325_s21  ;;  %s6299_s23 = int_to_ptr.vmem [resolvable:$true] %s3312_s23 }
  0x4e   :  { %v174_v10 = vld [vmem:[#allocation8 + $0x8] sm:$0xff]  ;;  %v173_v12 = vld [vmem:[#allocation8] sm:$0xff]  ;;  %v5430_v14 = vpack.c.bf16 %v90_v9, %v89_v8  ;;  %v91_v15 = vld [vmem:[#allocation7 + $0x30] sm:$0xff]  ;;  %s5249_s25 = scalar_lea.vmem %s3326_s21, 128  ;;  %p5254_p5 = scmp.lt.s32.totalorder %s3326_s21, %s3326_s21 }
  0x4f   :  { %4190 = vmatpush3.bf16.msra.mxu0 %v5423_v5  ;;  %v178_v13 = vld [vmem:[#allocation8 + $0x28] sm:$0xff]  ;;  %v5432_v16 = vpack.c.bf16 %v179_v11, %v174_v10  ;;  %v92_v18 = vld [vmem:[#allocation7 + $0x38] sm:$0xff]  ;;  %v189_v20 = vld [vmem:[#allocation8 + $0x80] sm:$0xff]  ;;  %p5250_p4 = scmp.ne.s32.totalorder %s3326_s21, %s5249_s25  ;;  %p5255_p6 = scmp.lt.s32.totalorder %s5249_s25, %s5249_s25 }
  0x50   :  { %4191 = vmatprep.subr.bf16.mxu0 %v6343_v0  ;;  %v5434_v17 = vpack.c.bf16 %v178_v13, %v173_v12  ;;  %v184_v19 = vld [vmem:[#allocation8 + $0x58] sm:$0xff]  ;;  %v183_v22 = vld [vmem:[#allocation8 + $0x50] sm:$0xff]  ;;  %v5444_v25 = vpack.c.bf16 %v92_v18, %v91_v15  ;;  %v194_v26 = vld [vmem:[#allocation8 + $0xa8] sm:$0xff] }
  0x51   :  { %4213 = vmatprep.subr.bf16.mxu1 %v5432_v16  ;;  %v5438_v21 = vpack.c.bf16 %v189_v20, %v184_v19  ;;  %v188_v23 = vld [vmem:[#allocation8 + $0x78] sm:$0xff]  ;;  %v199_v27 = vld [vmem:[#allocation8 + $0xd0] sm:$0xff]  ;;  %v193_v28 = vld [vmem:[#allocation8 + $0xa0] sm:$0xff]  ;;  %p5256_p7 = por %p5255_p6, %p5254_p5 }
  0x52   :  { %4215 = vmatpush1.bf16.msra.mxu1 %v5434_v17  ;;  %v5441_v24 = vpack.c.bf16 %v188_v23, %v183_v22  ;;  %v93_v29 = vld [vmem:[#allocation7 + $0x40] sm:$0xff]  ;;  %v94_v30 = vld [vmem:[#allocation7 + $0x48] sm:$0xff]  ;;  %v5448_v31 = vpack.c.bf16 %v199_v27, %v194_v26  ;;  %v204_v33 = vld [vmem:[#allocation8 + $0xf8] sm:$0xff] }
  0x53   :  { %4193 = vmatpush3.bf16.msra.mxu0 %v5426_v7  ;;  %4217 = vmatprep.subr.bf16.mxu1 %v5438_v21  ;;  %v198_v32 = vld [vmem:[#allocation8 + $0xc8] sm:$0xff]  ;;  %v209_v35 = vld [vmem:[#allocation8 + $0x120] sm:$0xff]  ;;  %v5454_v36 = vpack.c.bf16 %v94_v30, %v93_v29  ;;  %v95_v37 = vld [vmem:[#allocation7 + $0x50] sm:$0xff]  ;;  %p5257_p8 = pnand %p5256_p7, %p5250_p4 }
  0x54   :  { %4194 = vmatprep.subr.bf16.mxu0 %v6343_v0  ;;  %v5451_v34 = vpack.c.bf16 %v198_v32, %v193_v28  ;;  %v5457_v38 = vpack.c.bf16 %v209_v35, %v204_v33  ;;  %v203_v39 = vld [vmem:[#allocation8 + $0xf0] sm:$0xff]  ;;  %v208_v40 = vld [vmem:[#allocation8 + $0x118] sm:$0xff]  ;;  %v214_v42 = vld [vmem:[#allocation8 + $0x148] sm:$0xff] }
  0x55   :  { %v96_v41 = vld [vmem:[#allocation7 + $0x58] sm:$0xff]  ;;  %v219_v43 = vld [vmem:[#allocation8 + $0x170] sm:$0xff]  ;;  %v5461_v44 = vpack.c.bf16 %v208_v40, %v203_v39  ;;  %v97_v46 = vld [vmem:[#allocation7 + $0x60] sm:$0xff] }
  0x56   :  { %4219 = vmatpush1.bf16.msra.mxu1 %v5441_v24  ;;  %v5464_v45 = vpack.c.bf16 %v96_v41, %v95_v37  ;;  %v5467_v47 = vpack.c.bf16 %v219_v43, %v214_v42  ;;  %v213_v48 = vld [vmem:[#allocation8 + $0x140] sm:$0xff]  ;;  %v218_v49 = vld [vmem:[#allocation8 + $0x168] sm:$0xff]  ;;  %v224_v51 = vld [vmem:[#allocation8 + $0x198] sm:$0xff] }
  0x57   :  { %4196 = vmatpush3.bf16.msra.mxu0 %v5430_v14  ;;  %4221 = vmatprep.subr.bf16.mxu1 %v5448_v31  ;;  %v98_v50 = vld [vmem:[#allocation7 + $0x68] sm:$0xff]  ;;  %v229_v52 = vld [vmem:[#allocation8 + $0x1c0] sm:$0xff]  ;;  %v5471_v53 = vpack.c.bf16 %v218_v49, %v213_v48  ;;  %v99_v55 = vld [vmem:[#allocation7 + $0x70] sm:$0xff] }
  0x58   :  { %4197 = vmatprep.subr.bf16.mxu0 %v6343_v0  ;;  %v5474_v54 = vpack.c.bf16 %v98_v50, %v97_v46  ;;  %v5477_v56 = vpack.c.bf16 %v229_v52, %v224_v51  ;;  %v223_v57 = vld [vmem:[#allocation8 + $0x190] sm:$0xff]  ;;  %v228_v58 = vld [vmem:[#allocation8 + $0x1b8] sm:$0xff]  ;;  %v234_v60 = vld [vmem:[#allocation8 + $0x1e8] sm:$0xff] }
  0x59   :  { %v100_v59 = vld [vmem:[#allocation7 + $0x78] sm:$0xff]  ;;  %v239_v61 = vld [vmem:[#allocation8 + $0x210] sm:$0xff]  ;;  %v181_v63 = vld [vmem:[#allocation8 + $0x40] sm:$0xff]  ;;  %v5481_v2 = vpack.c.bf16 %v228_v58, %v223_v57 }
  0x5a   :  { %4223 = vmatpush1.bf16.msra.mxu1 %v5451_v34  ;;  %v176_v62 = vld [vmem:[#allocation8 + $0x18] sm:$0xff]  ;;  %v5484_v3 = vpack.c.bf16 %v100_v59, %v99_v55  ;;  %v5487_v4 = vpack.c.bf16 %v239_v61, %v234_v60  ;;  %v233_v6 = vld [vmem:[#allocation8 + $0x1e0] sm:$0xff]  ;;  %v238_v8 = vld [vmem:[#allocation8 + $0x208] sm:$0xff] }
  0x5b   :  { %4199 = vmatpush3.bf16.msra.mxu0 %v5444_v25  ;;  %4225 = vmatprep.subr.bf16.mxu1 %v5457_v38  ;;  %v5490_v9 = vpack.c.bf16 %v181_v63, %v176_v62  ;;  %v175_v10 = vld [vmem:[#allocation8 + $0x10] sm:$0xff]  ;;  %v180_v11 = vld [vmem:[#allocation8 + $0x38] sm:$0xff]  ;;  %v186_v12 = vld [vmem:[#allocation8 + $0x68] sm:$0xff]  ;;  %v5493_v15 = vpack.c.bf16 %v238_v8, %v233_v6 }
  0x5c   :  { %4200 = vmatprep.subr.bf16.mxu0 %v6343_v0  ;;  %v191_v13 = vld [vmem:[#allocation8 + $0x90] sm:$0xff]  ;;  %v5496_v18 = vld [vmem:[#allocation5] sm:$0xff]  ;;  %v5498_v19 = vpack.c.bf16 %v180_v11, %v175_v10  ;;  %v185_v22 = vld [vmem:[#allocation8 + $0x60] sm:$0xff] }
  0x5d   :  { %v5502_v20 = vpack.c.bf16 %v191_v13, %v186_v12  ;;  %v190_v23 = vld [vmem:[#allocation8 + $0x88] sm:$0xff]  ;;  %v196_v26 = vld [vmem:[#allocation8 + $0xb8] sm:$0xff]  ;;  %v201_v27 = vld [vmem:[#allocation8 + $0xe0] sm:$0xff] }
  0x5e   :  { %4227 = vmatpush1.bf16.msra.mxu1 %v5461_v44  ;;  %v5507_v28 = vpack.c.bf16 %v190_v23, %v185_v22  ;;  %v5511_v29 = vpack.c.bf16 %v201_v27, %v196_v26  ;;  %v195_v30 = vld [vmem:[#allocation8 + $0xb0] sm:$0xff]  ;;  %v200_v32 = vld [vmem:[#allocation8 + $0xd8] sm:$0xff]  ;;  %v206_v33 = vld [vmem:[#allocation8 + $0x108] sm:$0xff] }
  0x5f   :  { %4202 = vmatpush3.bf16.msra.mxu0 %v5454_v36  ;;  %4229 = vmatprep.subr.bf16.mxu1 %v5467_v47  ;;  %v211_v35 = vld [vmem:[#allocation8 + $0x130] sm:$0xff]  ;;  %v5514_v37 = vpack.c.bf16 %v200_v32, %v195_v30  ;;  %v205_v40 = vld [vmem:[#allocation8 + $0x100] sm:$0xff]  ;;  %v210_v41 = vld [vmem:[#allocation8 + $0x128] sm:$0xff] }
  0x60   :  { %4203 = vmatprep.subr.bf16.mxu0 %v6343_v0  ;;  %v5517_v39 = vpack.c.bf16 %v211_v35, %v206_v33  ;;  %v216_v42 = vld [vmem:[#allocation8 + $0x158] sm:$0xff]  ;;  %v221_v43 = vld [vmem:[#allocation8 + $0x180] sm:$0xff]  ;;  %v5520_v46 = vpack.c.bf16 %v210_v41, %v205_v40  ;;  %v215_v49 = vld [vmem:[#allocation8 + $0x150] sm:$0xff] }
  0x61   :  { %v5523_v48 = vpack.c.bf16 %v221_v43, %v216_v42  ;;  %v220_v50 = vld [vmem:[#allocation8 + $0x178] sm:$0xff]  ;;  %v226_v51 = vld [vmem:[#allocation8 + $0x1a8] sm:$0xff]  ;;  %v231_v52 = vld [vmem:[#allocation8 + $0x1d0] sm:$0xff] }
  0x62   :  { %4231 = vmatpush1.bf16.msra.mxu1 %v5471_v53  ;;  %v5526_v55 = vpack.c.bf16 %v220_v50, %v215_v49  ;;  %v5529_v57 = vpack.c.bf16 %v231_v52, %v226_v51  ;;  %v225_v58 = vld [vmem:[#allocation8 + $0x1a0] sm:$0xff]  ;;  %v230_v59 = vld [vmem:[#allocation8 + $0x1c8] sm:$0xff]  ;;  %v236_v60 = vld [vmem:[#allocation8 + $0x1f8] sm:$0xff] }
  0x63   :  { %4205 = vmatpush3.bf16.msra.mxu0 %v5464_v45  ;;  %4233 = vmatprep.subr.bf16.mxu1 %v5477_v56  ;;  %v241_v61 = vld [vmem:[#allocation8 + $0x220] sm:$0xff]  ;;  %v5532_v62 = vpack.c.bf16 %v230_v59, %v225_v58  ;;  %v235_v6 = vld [vmem:[#allocation8 + $0x1f0] sm:$0xff]  ;;  %v240_v8 = vld [vmem:[#allocation8 + $0x218] sm:$0xff] }
  0x64   :  { %4206 = vmatprep.subr.bf16.mxu0 %v6343_v0  ;;  %v5535_v63 = vpack.c.bf16 %v241_v61, %v236_v60  ;;  %v5538_v10 = vpack.c.bf16 %v240_v8, %v235_v6  ;;  %v244_v11 = vld [vmem:[#allocation8 + $0x238] sm:$0xff]  ;;  %v249_v12 = vld [vmem:[#allocation8 + $0x260] sm:$0xff]  ;;  %v243_v22 = vld [vmem:[#allocation8 + $0x230] sm:$0xff] }
  0x65   :  { %v5542_v13 = vpack.c.bf16 %v249_v12, %v244_v11  ;;  %v248_v23 = vld [vmem:[#allocation8 + $0x258] sm:$0xff]  ;;  %v246_v26 = vld [vmem:[#allocation8 + $0x248] sm:$0xff]  ;;  %v251_v30 = vld [vmem:[#allocation8 + $0x270] sm:$0xff] }
  0x66   :  { %4235 = vmatpush1.bf16.msra.mxu1 %v5481_v2  ;;  %v5544_v27 = vpack.c.bf16 %v248_v23, %v243_v22  ;;  %v245_v32 = vld [vmem:[#allocation8 + $0x240] sm:$0xff]  ;;  %v250_v33 = vld [vmem:[#allocation8 + $0x268] sm:$0xff]  ;;  %v5547_v35 = vpack.c.bf16 %v251_v30, %v246_v26  ;;  %v84_v41 = vld [vmem:[#allocation2] sm:$0xff] }
  0x67   :  { %4208 = vmatpush3.bf16.msra.mxu0 %v5474_v54  ;;  %4237 = vmatprep.subr.bf16.mxu1 %v5487_v4  ;;  %6350 = vst [vmem:[#allocation18_spill] sm:$0xff] %v5542_v13  ;;  %v5549_v40 = vpack.c.bf16 %v250_v33, %v245_v32  ;;  %v177_v42 = vld [vmem:[#allocation8 + $0x20] sm:$0xff]  ;;  %v182_v43 = vld [vmem:[#allocation8 + $0x48] sm:$0xff]  ;;  %v187_v59 = vld [vmem:[#allocation8 + $0x70] sm:$0xff] }
  0x68   :  { %4209 = vmatprep.subr.bf16.mxu0 %v6343_v0  ;;  %6351 = vst [vmem:[#allocation19_spill] sm:$0xff] %v5544_v27  ;;  %v5556_v52 = vpack.c.bf16 %v182_v43, %v177_v42  ;;  %v192_v60 = vld [vmem:[#allocation8 + $0x98] sm:$0xff]  ;;  %v197_v6 = vld [vmem:[#allocation8 + $0xc0] sm:$0xff]  ;;  %v202_v8 = vld [vmem:[#allocation8 + $0xe8] sm:$0xff] }
  0x69   :  { %v5559_v61 = vpack.c.bf16 %v192_v60, %v187_v59  ;;  %v5569_v11 = vpack.c.bf16 %v202_v8, %v197_v6  ;;  %v207_v12 = vld [vmem:[#allocation8 + $0x110] sm:$0xff]  ;;  %v212_v22 = vld [vmem:[#allocation8 + $0x138] sm:$0xff]  ;;  %v217_v26 = vld [vmem:[#allocation8 + $0x160] sm:$0xff] }
  0x6a   :  { %4239 = vmatpush1.bf16.msra.mxu1 %v5493_v15  ;;  %v5575_v23 = vpack.c.bf16 %v212_v22, %v207_v12  ;;  %v222_v30 = vld [vmem:[#allocation8 + $0x188] sm:$0xff]  ;;  %v227_v33 = vld [vmem:[#allocation8 + $0x1b0] sm:$0xff]  ;;  %v237_v43 = vld [vmem:[#allocation8 + $0x200] sm:$0xff] }
  0x6b   :  { %4211 = vmatpush3.bf16.msra.mxu0 %v5484_v3  ;;  %4241 = vmatprep.subr.bf16.mxu1 %v5542_v13  ;;  %v5581_v32 = vpack.c.bf16 %v222_v30, %v217_v26  ;;  %v252_v59 = vld [vmem:[#allocation8 + $0x278] sm:$0xff] }
  0x6c   :  { %4245 = vmatprep.subr.bf16.mxu0 %v5490_v9 }
  0x6e   :  { %3661 = vmatmul.mubr.f32.vlgmr.msra.gmra.mrb[0].mxu0 %v5496_v18  ;;  %4243 = vmatpush1.bf16.msra.mxu1 %v5544_v27 }
  0x6f   :  { %4247 = vmatpush1.bf16.msra.mxu0 %v5498_v19  ;;  %388 = vmatprep.mubr.f32.mxu0 %v6340_v1 }
  0x70   :  { %4249 = vmatprep.subr.bf16.mxu0 %v5502_v20  ;;  %4276 = vmatprep.subr.bf16.mxu1 %v6343_v0 }
  0x73   :  { %4251 = vmatpush1.bf16.msra.mxu0 %v5507_v28 }
  0x74   :  { %4253 = vmatprep.subr.bf16.mxu0 %v5511_v29 }
  0x77   :  { %4255 = vmatpush1.bf16.msra.mxu0 %v5514_v37 }
  0x78   :  { %4257 = vmatprep.subr.bf16.mxu0 %v5517_v39 }
  0x7b   :  { %4259 = vmatpush1.bf16.msra.mxu0 %v5520_v46 }
  0x7c   :  { %4261 = vmatprep.subr.bf16.mxu0 %v5523_v48 }
  0x7f   :  { %4263 = vmatpush1.bf16.msra.mxu0 %v5526_v55 }
  0x80   :  { %4265 = vmatprep.subr.bf16.mxu0 %v5529_v57 }
  0x83   :  { %4267 = vmatpush1.bf16.msra.mxu0 %v5532_v62 }
  0x84   :  { %4269 = vmatprep.subr.bf16.mxu0 %v5535_v63 }
  0x87   :  { %4271 = vmatpush1.bf16.msra.mxu0 %v5538_v10 }
  0x88   :  { %4273 = vmatprep.subr.bf16.mxu0 %v5547_v35 }
  0x8b   :  { %4275 = vmatpush1.bf16.msra.mxu0 %v5549_v40 }
  0x8c   :  { %4300 = vmatprep.subr.bf16.mxu0 %v6343_v0 }
 0x141   :  { %v167_v49 = vpop.f32.mrb[0].mxu0 }
 0x142   :  { %v171_v50 = vadd.f32 %v167_v49, %v84_v41  ;;  %v3662_v51 = vpop.f32.mrb[1].mxu0  ;;  %v232_v41 = vld [vmem:[#allocation8 + $0x1d8] sm:$0xff]  ;;  %v242_v49 = vld [vmem:[#allocation8 + $0x228] sm:$0xff] }
 0x143   :  { %v5587_v42 = vpack.c.bf16 %v232_v41, %v227_v33  ;;  %v247_v51 = vld [vmem:[#allocation8 + $0x250] sm:$0xff] }
 0x144   :  { %v172_v58 = vmax.f32 %v171_v50, 0.0  ;;  %v5593_v50 = vpack.c.bf16 %v242_v49, %v237_v43  ;;  %v5599_v60 = vpack.c.bf16 %v252_v59, %v247_v51 }
 0x146   :  { %318 = vmatmul.mubr.f32.vlgmr.msra.gmra.mrb[0].mxu1 %v172_v58  ;;  %389 = vmatmul.mubr.f32.vlgmr.msra.gmra.mrb[2].mxu0 %v172_v58 }
 0x147   :  { %4278 = vmatpush3.bf16.msra.mxu1 %v5556_v52  ;;  %3695 = vmatprep.mubr.msk.f32.mxu1 %vm5312_vm0, %v6340_v1 }
 0x148   :  { %4279 = vmatprep.subr.bf16.mxu1 %v6343_v0  ;;  %4302 = vmatpush3.bf16.msra.mxu0 %v5423_v5 }
 0x149   :  { %4303 = vmatprep.subr.bf16.mxu0 %v6343_v0  ;;  %3730 = vmatprep.mubr.msk.f32.mxu0 %vm5312_vm0, %v6340_v1 }
 0x14b   :  { %4281 = vmatpush3.bf16.msra.mxu1 %v5559_v61 }
 0x14c   :  { %4282 = vmatprep.subr.bf16.mxu1 %v6343_v0  ;;  %4305 = vmatpush3.bf16.msra.mxu0 %v5426_v7 }
 0x14d   :  { %4306 = vmatprep.subr.bf16.mxu0 %v6343_v0 }
 0x14f   :  { %4284 = vmatpush3.bf16.msra.mxu1 %v5569_v11 }
 0x150   :  { %4285 = vmatprep.subr.bf16.mxu1 %v6343_v0  ;;  %4308 = vmatpush3.bf16.msra.mxu0 %v5430_v14 }
 0x151   :  { %4309 = vmatprep.subr.bf16.mxu0 %v6343_v0 }
 0x153   :  { %4287 = vmatpush3.bf16.msra.mxu1 %v5575_v23 }
 0x154   :  { %4288 = vmatprep.subr.bf16.mxu1 %v6343_v0  ;;  %4311 = vmatpush3.bf16.msra.mxu0 %v5444_v25 }
 0x155   :  { %4312 = vmatprep.subr.bf16.mxu0 %v6343_v0 }
 0x157   :  { %4290 = vmatpush3.bf16.msra.mxu1 %v5581_v32 }
 0x158   :  { %4291 = vmatprep.subr.bf16.mxu1 %v6343_v0  ;;  %4314 = vmatpush3.bf16.msra.mxu0 %v5454_v36 }
 0x159   :  { %4315 = vmatprep.subr.bf16.mxu0 %v6343_v0 }
 0x15b   :  { %4293 = vmatpush3.bf16.msra.mxu1 %v5587_v42 }
 0x15c   :  { %4294 = vmatprep.subr.bf16.mxu1 %v6343_v0  ;;  %4317 = vmatpush3.bf16.msra.mxu0 %v5464_v45 }
 0x15d   :  { %4318 = vmatprep.subr.bf16.mxu0 %v6343_v0 }
 0x15f   :  { %4296 = vmatpush3.bf16.msra.mxu1 %v5593_v50 }
 0x160   :  { %4297 = vmatprep.subr.bf16.mxu1 %v6343_v0  ;;  %4320 = vmatpush3.bf16.msra.mxu0 %v5474_v54 }
 0x161   :  { %4321 = vmatprep.subr.bf16.mxu0 %v6343_v0 }
 0x163   :  { %4299 = vmatpush3.bf16.msra.mxu1 %v5599_v60 }
 0x164   :  { %4323 = vmatpush3.bf16.msra.mxu0 %v5484_v3  ;;  %4325 = vmatprep.subr.bf16.mxu1 %v5432_v16 }
 0x165   :  { %4357 = vmatprep.subr.bf16.mxu0 %v5490_v9 }
 0x166   :  { %3696 = vmatmul.mubr.f32.vlgmr.msra.gmra.mrb[2].mxu1 %v172_v58 }
 0x167   :  { %4327 = vmatpush1.bf16.msra.mxu1 %v5434_v17  ;;  %719 = vmatprep.mubr.f32.mxu1 %v6340_v1 }
 0x168   :  { %4329 = vmatprep.subr.bf16.mxu1 %v5438_v21 }
 0x16b   :  { %4331 = vmatpush1.bf16.msra.mxu1 %v5441_v24 }
 0x16c   :  { %4333 = vmatprep.subr.bf16.mxu1 %v5448_v31 }
 0x16f   :  { %4335 = vmatpush1.bf16.msra.mxu1 %v5451_v34 }
 0x170   :  { %4337 = vmatprep.subr.bf16.mxu1 %v5457_v38 }
 0x173   :  { %4339 = vmatpush1.bf16.msra.mxu1 %v5461_v44 }
 0x174   :  { %4341 = vmatprep.subr.bf16.mxu1 %v5467_v47 }
 0x177   :  { %4343 = vmatpush1.bf16.msra.mxu1 %v5471_v53 }
 0x178   :  { %4345 = vmatprep.subr.bf16.mxu1 %v5477_v56 }
 0x17b   :  { %4347 = vmatpush1.bf16.msra.mxu1 %v5481_v2 }
 0x17c   :  { %4349 = vmatprep.subr.bf16.mxu1 %v5487_v4 }
 0x17f   :  { %4351 = vmatpush1.bf16.msra.mxu1 %v5493_v15 }
 0x180   :  { %4353 = vmatprep.subr.bf16.mxu1 %v5542_v13 }
 0x183   :  { %4355 = vmatpush1.bf16.msra.mxu1 %v5544_v27 }
 0x184   :  { %4388 = vmatprep.subr.bf16.mxu1 %v6343_v0 }
 0x219   :  { %v319_v58 = vpop.f32.mrb[0].mxu1  ;;  %v390_v6 = vpop.f32.mrb[2].mxu0 }
 0x21a   :  { %v465_v8 = vmax.f32 %v319_v58, 0.0  ;;  %v3341_v12 = vmul.f32 -1.442695, %v390_v6  ;;  %v321_v22 = vpop.f32.mrb[1].mxu1  ;;  %v392_v26 = vpop.f32.mrb[3].mxu0 }
 0x21b   :  { %v466_v30 = vmax.f32 %v321_v22, 0.0  ;;  %v3340_v33 = vmul.f32 -1.442695, %v392_v26 }
 0x21c   :  { %5097 = vpow2.f32 %v3341_v12 }
 0x21d   :  { %v467_v41 = vsub.f32 %v465_v8, %v466_v30  ;;  %5099 = vpow2.f32 %v3340_v33  ;;  %v6352_v8 = vmov 0.0   ;;  %v1305_v30 = vld [vmem:[#allocation7 + $0x60] sm:$0xff]  ;;  %v1306_v33 = vld [vmem:[#allocation7 + $0x68] sm:$0xff] }
 0x226   :  { %v5098_v43 = vpop.eup %5097 }
 0x227   :  { %v5100_v49 = vpop.eup %5099  ;;  %v478_v51 = vadd.f32 1.0, %v5098_v43  ;;  %v1307_v43 = vld [vmem:[#allocation7 + $0x70] sm:$0xff] }
 0x228   :  { %v471_v59 = vadd.f32 1.0, %v5100_v49  ;;  %v1308_v49 = vld [vmem:[#allocation7 + $0x78] sm:$0xff] }
 0x229   :  { %5101 = vrcp.f32 %v478_v51  ;;  %v5767_v51 = vpack.c.bf16 %v1308_v49, %v1307_v43 }
 0x22a   :  { %5103 = vrcp.f32 %v471_v59  ;;  %v1382_v59 = vld [vmem:[#allocation8 + $0x8] sm:$0xff] }
 0x233   :  { %v5102_v1 = vpop.eup %5101 }
 0x234   :  { %v5104_v27 = vpop.eup %5103  ;;  %v481_v0 = vmul.f32 %v5102_v1, %v5496_v18  ;;  %v486_v1 = vld [vmem:[#allocation2 + $0x8] sm:$0xff] }
 0x235   :  { %v474_v13 = vmul.f32 %v5104_v27, %v467_v41  ;;  %v5763_v41 = vpack.c.bf16 %v1306_v33, %v1305_v30 }
 0x237   :  { %v5626_v58 = vadd.f32 %v481_v0, %v474_v13  ;;  %v6353_v0 = vmov 0.0|0.0  }
 0x239   :  { %v461_v6 = vpop.f32.mrb[2].mxu1  ;;  %3731 = vmatmul.mubr.f32.vlgmr.msra.gmra.mrb[4].mxu0 %v5626_v58 }
 0x23a   :  { %v483_v22 = vmax.f32 %v461_v6, 0.0  ;;  %v3697_v12 = vpop.f32.mrb[3].mxu1  ;;  %4359 = vmatpush1.bf16.msra.mxu0 %v5498_v19  ;;  %790 = vmatprep.mubr.f32.mxu0 %v6352_v8  ;;  %v1381_v6 = vld [vmem:[#allocation8] sm:$0xff] }
 0x23b   :  { %4361 = vmatprep.subr.bf16.mxu0 %v5502_v20  ;;  %v1386_v12 = vld [vmem:[#allocation8 + $0x28] sm:$0xff] }
 0x23c   :  { %484 = vst [vmem:[#allocation10] sm:$0xff] %v483_v22 }
 0x23e   :  { %4363 = vmatpush1.bf16.msra.mxu0 %v5507_v28 }
 0x23f   :  { %4365 = vmatprep.subr.bf16.mxu0 %v5511_v29 }
 0x242   :  { %4367 = vmatpush1.bf16.msra.mxu0 %v5514_v37 }
 0x243   :  { %4369 = vmatprep.subr.bf16.mxu0 %v5517_v39 }
 0x246   :  { %4371 = vmatpush1.bf16.msra.mxu0 %v5520_v46 }
 0x247   :  { %4373 = vmatprep.subr.bf16.mxu0 %v5523_v48 }
 0x24a   :  { %4375 = vmatpush1.bf16.msra.mxu0 %v5526_v55 }
 0x24b   :  { %4377 = vmatprep.subr.bf16.mxu0 %v5529_v57 }
 0x24e   :  { %4379 = vmatpush1.bf16.msra.mxu0 %v5532_v62 }
 0x24f   :  { %4381 = vmatprep.subr.bf16.mxu0 %v5535_v63 }
 0x252   :  { %4383 = vmatpush1.bf16.msra.mxu0 %v5538_v10 }
 0x253   :  { %4385 = vmatprep.subr.bf16.mxu0 %v5547_v35 }
 0x256   :  { %4387 = vmatpush1.bf16.msra.mxu0 %v5549_v40 }
 0x257   :  { %4412 = vmatprep.subr.bf16.mxu0 %v6353_v0 }
 0x30c   :  { %v569_v18 = vpop.f32.mrb[4].mxu0 }
 0x30d   :  { %v573_v13 = vadd.f32 %v569_v18, %v486_v1  ;;  %v3732_v27 = vpop.f32.mrb[5].mxu0  ;;  %v1384_v1 = vld [vmem:[#allocation8 + $0x18] sm:$0xff]  ;;  %v1389_v18 = vld [vmem:[#allocation8 + $0x40] sm:$0xff] }
 0x30e   :  { %v5775_v27 = vpack.c.bf16 %v1389_v18, %v1384_v1 }
 0x30f   :  { %v574_v26 = vmax.f32 %v573_v13, 0.0  ;;  %v5773_v13 = vpack.c.bf16 %v1386_v12, %v1381_v6 }
 0x311   :  { %720 = vmatmul.mubr.f32.vlgmr.msra.gmra.mrb[4].mxu1 %v574_v26  ;;  %791 = vmatmul.mubr.f32.vlgmr.msra.gmra.mrb[6].mxu0 %v574_v26 }
 0x312   :  { %4390 = vmatpush3.bf16.msra.mxu1 %v5556_v52  ;;  %3765 = vmatprep.mubr.msk.f32.mxu1 %vm5312_vm0, %v6352_v8 }
 0x313   :  { %4391 = vmatprep.subr.bf16.mxu1 %v6353_v0  ;;  %4414 = vmatpush3.bf16.msra.mxu0 %v5423_v5  ;;  %v6354_v5 = vld [vmem:[#allocation18_spill] sm:$0xff] }
 0x314   :  { %4415 = vmatprep.subr.bf16.mxu0 %v6353_v0  ;;  %3800 = vmatprep.mubr.msk.f32.mxu0 %vm5312_vm0, %v6352_v8 }
 0x316   :  { %4393 = vmatpush3.bf16.msra.mxu1 %v5559_v61 }
 0x317   :  { %4394 = vmatprep.subr.bf16.mxu1 %v6353_v0  ;;  %4417 = vmatpush3.bf16.msra.mxu0 %v5426_v7  ;;  %v6355_v7 = vld [vmem:[#allocation19_spill] sm:$0xff] }
 0x318   :  { %4418 = vmatprep.subr.bf16.mxu0 %v6353_v0 }
 0x31a   :  { %4396 = vmatpush3.bf16.msra.mxu1 %v5569_v11 }
 0x31b   :  { %4397 = vmatprep.subr.bf16.mxu1 %v6353_v0  ;;  %4420 = vmatpush3.bf16.msra.mxu0 %v5430_v14 }
 0x31c   :  { %4421 = vmatprep.subr.bf16.mxu0 %v6353_v0 }
 0x31e   :  { %4399 = vmatpush3.bf16.msra.mxu1 %v5575_v23 }
 0x31f   :  { %4400 = vmatprep.subr.bf16.mxu1 %v6353_v0  ;;  %4423 = vmatpush3.bf16.msra.mxu0 %v5444_v25 }
 0x320   :  { %4424 = vmatprep.subr.bf16.mxu0 %v6353_v0 }
 0x322   :  { %4402 = vmatpush3.bf16.msra.mxu1 %v5581_v32 }
 0x323   :  { %4403 = vmatprep.subr.bf16.mxu1 %v6353_v0  ;;  %4426 = vmatpush3.bf16.msra.mxu0 %v5454_v36 }
 0x324   :  { %4427 = vmatprep.subr.bf16.mxu0 %v6353_v0 }
 0x326   :  { %4405 = vmatpush3.bf16.msra.mxu1 %v5587_v42 }
 0x327   :  { %4406 = vmatprep.subr.bf16.mxu1 %v6353_v0  ;;  %4429 = vmatpush3.bf16.msra.mxu0 %v5464_v45 }
 0x328   :  { %4430 = vmatprep.subr.bf16.mxu0 %v6353_v0 }
 0x32a   :  { %4408 = vmatpush3.bf16.msra.mxu1 %v5593_v50 }
 0x32b   :  { %4409 = vmatprep.subr.bf16.mxu1 %v6353_v0  ;;  %4432 = vmatpush3.bf16.msra.mxu0 %v5474_v54 }
 0x32c   :  { %4433 = vmatprep.subr.bf16.mxu0 %v6353_v0 }
 0x32e   :  { %4411 = vmatpush3.bf16.msra.mxu1 %v5599_v60 }
 0x32f   :  { %4435 = vmatpush3.bf16.msra.mxu0 %v5484_v3  ;;  %4437 = vmatprep.subr.bf16.mxu1 %v5432_v16 }
 0x330   :  { %4469 = vmatprep.subr.bf16.mxu0 %v5490_v9 }
 0x331   :  { %3766 = vmatmul.mubr.f32.vlgmr.msra.gmra.mrb[6].mxu1 %v574_v26  ;;  %v1392_v26 = vld [vmem:[#allocation8 + $0x58] sm:$0xff] }
 0x332   :  { %4439 = vmatpush1.bf16.msra.mxu1 %v5434_v17  ;;  %1122 = vmatprep.mubr.f32.mxu1 %v6352_v8 }
 0x333   :  { %4441 = vmatprep.subr.bf16.mxu1 %v5438_v21 }
 0x336   :  { %4443 = vmatpush1.bf16.msra.mxu1 %v5441_v24 }
 0x337   :  { %4445 = vmatprep.subr.bf16.mxu1 %v5448_v31 }
 0x33a   :  { %4447 = vmatpush1.bf16.msra.mxu1 %v5451_v34 }
 0x33b   :  { %4449 = vmatprep.subr.bf16.mxu1 %v5457_v38 }
 0x33e   :  { %4451 = vmatpush1.bf16.msra.mxu1 %v5461_v44 }
 0x33f   :  { %4453 = vmatprep.subr.bf16.mxu1 %v5467_v47 }
 0x342   :  { %4455 = vmatpush1.bf16.msra.mxu1 %v5471_v53 }
 0x343   :  { %4457 = vmatprep.subr.bf16.mxu1 %v5477_v56 }
 0x346   :  { %4459 = vmatpush1.bf16.msra.mxu1 %v5481_v2 }
 0x347   :  { %4461 = vmatprep.subr.bf16.mxu1 %v5487_v4 }
 0x34a   :  { %4463 = vmatpush1.bf16.msra.mxu1 %v5493_v15 }
 0x34b   :  { %4465 = vmatprep.subr.bf16.mxu1 %v6354_v5  ;;  %v1397_v5 = vld [vmem:[#allocation8 + $0x80] sm:$0xff] }
 0x34e   :  { %4467 = vmatpush1.bf16.msra.mxu1 %v6355_v7  ;;  %v1391_v7 = vld [vmem:[#allocation8 + $0x50] sm:$0xff] }
 0x34f   :  { %4500 = vmatprep.subr.bf16.mxu1 %v6353_v0 }
 0x3e4   :  { %v721_v14 = vpop.f32.mrb[4].mxu1  ;;  %v792_v16 = vpop.f32.mrb[6].mxu0 }
 0x3e5   :  { %v867_v17 = vmax.f32 %v721_v14, 0.0  ;;  %v3343_v21 = vmul.f32 -1.442695, %v792_v16  ;;  %v723_v24 = vpop.f32.mrb[5].mxu1  ;;  %v794_v25 = vpop.f32.mrb[7].mxu0  ;;  %v1396_v14 = vld [vmem:[#allocation8 + $0x78] sm:$0xff]  ;;  %v5780_v16 = vpack.c.bf16 %v1397_v5, %v1392_v26 }
 0x3e6   :  { %v868_v31 = vmax.f32 %v723_v24, 0.0  ;;  %v3342_v34 = vmul.f32 -1.442695, %v794_v25  ;;  %v1407_v24 = vld [vmem:[#allocation8 + $0xd0] sm:$0xff]  ;;  %v1388_v5 = vld [vmem:[#allocation8 + $0x38] sm:$0xff] }
 0x3e7   :  { %5105 = vpow2.f32 %v3343_v21  ;;  %v1402_v21 = vld [vmem:[#allocation8 + $0xa8] sm:$0xff]  ;;  %v1383_v26 = vld [vmem:[#allocation8 + $0x10] sm:$0xff] }
 0x3e8   :  { %v869_v36 = vsub.f32 %v867_v17, %v868_v31  ;;  %5107 = vpow2.f32 %v3342_v34  ;;  %v5782_v17 = vpack.c.bf16 %v1396_v14, %v1391_v7  ;;  %v5785_v25 = vpack.c.bf16 %v1407_v24, %v1402_v21  ;;  %v1401_v31 = vld [vmem:[#allocation8 + $0xa0] sm:$0xff]  ;;  %v1406_v34 = vld [vmem:[#allocation8 + $0xc8] sm:$0xff]  ;;  %v1399_v24 = vld [vmem:[#allocation8 + $0x90] sm:$0xff] }
 0x3e9   :  { %v1394_v21 = vld [vmem:[#allocation8 + $0x68] sm:$0xff] }
 0x3f1   :  { %v5106_v38 = vpop.eup %5105 }
 0x3f2   :  { %v5108_v44 = vpop.eup %5107  ;;  %v880_v45 = vadd.f32 1.0, %v5106_v38  ;;  %v1412_v38 = vld [vmem:[#allocation8 + $0xf8] sm:$0xff] }
 0x3f3   :  { %v873_v47 = vadd.f32 1.0, %v5108_v44  ;;  %v1417_v44 = vld [vmem:[#allocation8 + $0x120] sm:$0xff] }
 0x3f4   :  { %5109 = vrcp.f32 %v880_v45  ;;  %v5791_v45 = vpack.c.bf16 %v1417_v44, %v1412_v38  ;;  %v5821_v44 = vpack.c.bf16 %v1399_v24, %v1394_v21  ;;  %v1443_v21 = vld [vmem:[#allocation8 + $0x1f0] sm:$0xff]  ;;  %v1448_v24 = vld [vmem:[#allocation8 + $0x218] sm:$0xff] }
 0x3f5   :  { %5111 = vrcp.f32 %v873_v47  ;;  %v1411_v47 = vld [vmem:[#allocation8 + $0xf0] sm:$0xff] }
 0x3fe   :  { %v5110_v53 = vpop.eup %5109 }
 0x3ff   :  { %v5112_v54 = vpop.eup %5111  ;;  %v883_v56 = vmul.f32 %v5110_v53, %v5626_v58  ;;  %v1387_v58 = vld [vmem:[#allocation8 + $0x30] sm:$0xff]  ;;  %v1416_v53 = vld [vmem:[#allocation8 + $0x118] sm:$0xff] }
 0x400   :  { %v876_v2 = vmul.f32 %v5112_v54, %v869_v36  ;;  %v5771_v22 = vpack.c.bf16 %v1387_v58, %v1382_v59  ;;  %v5788_v36 = vpack.c.bf16 %v1406_v34, %v1401_v31  ;;  %v1422_v54 = vld [vmem:[#allocation8 + $0x148] sm:$0xff]  ;;  %v5817_v34 = vpack.c.bf16 %v1388_v5, %v1383_v26  ;;  %v1444_v26 = vld [vmem:[#allocation8 + $0x1f8] sm:$0xff]  ;;  %v1449_v5 = vld [vmem:[#allocation8 + $0x220] sm:$0xff] }
 0x402   :  { %v5700_v3 = vadd.f32 %v883_v56, %v876_v2  ;;  %v1427_v56 = vld [vmem:[#allocation8 + $0x170] sm:$0xff]  ;;  %v5794_v2 = vpack.c.bf16 %v1416_v53, %v1411_v47  ;;  %v1393_v47 = vld [vmem:[#allocation8 + $0x60] sm:$0xff]  ;;  %v1398_v53 = vld [vmem:[#allocation8 + $0x88] sm:$0xff] }
 0x404   :  { %v863_v4 = vpop.f32.mrb[6].mxu1  ;;  %3801 = vmatmul.mubr.f32.vlgmr.msra.gmra.mrb[8].mxu0 %v5700_v3 }
 0x405   :  { %v885_v9 = vmax.f32 %v863_v4, 0.0  ;;  %v3767_v15 = vpop.f32.mrb[7].mxu1  ;;  %4471 = vmatpush1.bf16.msra.mxu0 %v5498_v19  ;;  %1193 = vmatprep.mubr.f32.mxu0 %v6352_v8  ;;  %v889_v19 = vld [vmem:[#allocation2 + $0x10] sm:$0xff]  ;;  %v5797_v4 = vpack.c.bf16 %v1427_v56, %v1422_v54  ;;  %v1404_v54 = vld [vmem:[#allocation8 + $0xb8] sm:$0xff]  ;;  %v1409_v56 = vld [vmem:[#allocation8 + $0xe0] sm:$0xff] }
 0x406   :  { %4473 = vmatprep.subr.bf16.mxu0 %v5502_v20  ;;  %v1426_v15 = vld [vmem:[#allocation8 + $0x168] sm:$0xff] }
 0x407   :  { %887 = vst [vmem:[#allocation10 + $0x8] sm:$0xff] %v885_v9  ;;  %v1421_v9 = vld [vmem:[#allocation8 + $0x140] sm:$0xff] }
 0x409   :  { %4475 = vmatpush1.bf16.msra.mxu0 %v5507_v28 }
 0x40a   :  { %4477 = vmatprep.subr.bf16.mxu0 %v5511_v29 }
 0x40d   :  { %4479 = vmatpush1.bf16.msra.mxu0 %v5514_v37 }
 0x40e   :  { %4481 = vmatprep.subr.bf16.mxu0 %v5517_v39  ;;  %v1293_v39 = vld [vmem:[#allocation7] sm:$0xff] }
 0x411   :  { %4483 = vmatpush1.bf16.msra.mxu0 %v5520_v46  ;;  %v1294_v46 = vld [vmem:[#allocation7 + $0x8] sm:$0xff] }
 0x412   :  { %4485 = vmatprep.subr.bf16.mxu0 %v5523_v48  ;;  %v5740_v48 = vpack.c.bf16 %v1294_v46, %v1293_v39  ;;  %v1436_v39 = vld [vmem:[#allocation8 + $0x1b8] sm:$0xff]  ;;  %v1442_v46 = vld [vmem:[#allocation8 + $0x1e8] sm:$0xff] }
 0x415   :  { %4487 = vmatpush1.bf16.msra.mxu0 %v5526_v55  ;;  %v1295_v55 = vld [vmem:[#allocation7 + $0x10] sm:$0xff] }
 0x416   :  { %4489 = vmatprep.subr.bf16.mxu0 %v5529_v57  ;;  %v1296_v57 = vld [vmem:[#allocation7 + $0x18] sm:$0xff] }
 0x419   :  { %4491 = vmatpush1.bf16.msra.mxu0 %v5532_v62  ;;  %v5744_v62 = vpack.c.bf16 %v1296_v57, %v1295_v55  ;;  %v1447_v55 = vld [vmem:[#allocation8 + $0x210] sm:$0xff] }
 0x41a   :  { %4493 = vmatprep.subr.bf16.mxu0 %v5535_v63  ;;  %v1297_v63 = vld [vmem:[#allocation7 + $0x20] sm:$0xff] }
 0x41d   :  { %4495 = vmatpush1.bf16.msra.mxu0 %v5538_v10  ;;  %v1298_v10 = vld [vmem:[#allocation7 + $0x28] sm:$0xff] }
 0x41e   :  { %4497 = vmatprep.subr.bf16.mxu0 %v5547_v35  ;;  %v5748_v35 = vpack.c.bf16 %v1298_v10, %v1297_v63  ;;  %v5809_v63 = vpack.c.bf16 %v1447_v55, %v1442_v46  ;;  %v1441_v10 = vld [vmem:[#allocation8 + $0x1e0] sm:$0xff]  ;;  %v1414_v46 = vld [vmem:[#allocation8 + $0x108] sm:$0xff]  ;;  %v1419_v55 = vld [vmem:[#allocation8 + $0x130] sm:$0xff] }
 0x420   :  { %6356 = vst [vmem:[#allocation18_spill] sm:$0xff] %v5809_v63 }
 0x421   :  { %4499 = vmatpush1.bf16.msra.mxu0 %v5549_v40  ;;  %v1299_v40 = vld [vmem:[#allocation7 + $0x30] sm:$0xff] }
 0x422   :  { %4524 = vmatprep.subr.bf16.mxu0 %v6353_v0 }
 0x4d7   :  { %v972_v20 = vpop.f32.mrb[8].mxu0 }
 0x4d8   :  { %v976_v28 = vadd.f32 %v972_v20, %v889_v19  ;;  %v3802_v29 = vpop.f32.mrb[9].mxu0  ;;  %v1432_v19 = vld [vmem:[#allocation8 + $0x198] sm:$0xff]  ;;  %v1437_v20 = vld [vmem:[#allocation8 + $0x1c0] sm:$0xff] }
 0x4d9   :  { %v5803_v29 = vpack.c.bf16 %v1437_v20, %v1432_v19  ;;  %v5829_v20 = vpack.c.bf16 %v1409_v56, %v1404_v54  ;;  %v1451_v56 = vld [vmem:[#allocation8 + $0x230] sm:$0xff] }
 0x4da   :  { %v977_v37 = vmax.f32 %v976_v28, 0.0  ;;  %v5800_v28 = vpack.c.bf16 %v1426_v15, %v1421_v9 }
 0x4dc   :  { %1123 = vmatmul.mubr.f32.vlgmr.msra.gmra.mrb[8].mxu1 %v977_v37  ;;  %1194 = vmatmul.mubr.f32.vlgmr.msra.gmra.mrb[10].mxu0 %v977_v37 }
 0x4dd   :  { %4502 = vmatpush3.bf16.msra.mxu1 %v5556_v52  ;;  %3835 = vmatprep.mubr.msk.f32.mxu1 %vm5312_vm0, %v6352_v8  ;;  %v1300_v52 = vld [vmem:[#allocation7 + $0x38] sm:$0xff] }
 0x4de   :  { %4503 = vmatprep.subr.bf16.mxu1 %v6353_v0  ;;  %3870 = vmatprep.mubr.msk.f32.mxu0 %vm5312_vm0, %v6352_v8 }
 0x4df   :  { %4526 = vmatpush3.bf16.msra.mxu0 %v5740_v48 }
 0x4e0   :  { %4527 = vmatprep.subr.bf16.mxu0 %v6353_v0 }
 0x4e1   :  { %4505 = vmatpush3.bf16.msra.mxu1 %v5559_v61  ;;  %v5752_v61 = vpack.c.bf16 %v1300_v52, %v1299_v40  ;;  %v1446_v40 = vld [vmem:[#allocation8 + $0x208] sm:$0xff] }
 0x4e2   :  { %4506 = vmatprep.subr.bf16.mxu1 %v6353_v0  ;;  %v5812_v52 = vpack.c.bf16 %v1446_v40, %v1441_v10  ;;  %v5835_v40 = vpack.c.bf16 %v1419_v55, %v1414_v46  ;;  %v1458_v46 = vld [vmem:[#allocation8 + $0x268] sm:$0xff] }
 0x4e3   :  { %4529 = vmatpush3.bf16.msra.mxu0 %v5744_v62 }
 0x4e4   :  { %4530 = vmatprep.subr.bf16.mxu0 %v6353_v0  ;;  %6357 = vst [vmem:[#allocation19_spill] sm:$0xff] %v5812_v52 }
 0x4e5   :  { %4508 = vmatpush3.bf16.msra.mxu1 %v5569_v11  ;;  %v1301_v11 = vld [vmem:[#allocation7 + $0x40] sm:$0xff] }
 0x4e6   :  { %4509 = vmatprep.subr.bf16.mxu1 %v6353_v0 }
 0x4e7   :  { %4532 = vmatpush3.bf16.msra.mxu0 %v5748_v35 }
 0x4e8   :  { %4533 = vmatprep.subr.bf16.mxu0 %v6353_v0 }
 0x4e9   :  { %4511 = vmatpush3.bf16.msra.mxu1 %v5575_v23  ;;  %v1302_v23 = vld [vmem:[#allocation7 + $0x48] sm:$0xff] }
 0x4ea   :  { %4512 = vmatprep.subr.bf16.mxu1 %v6353_v0 }
 0x4eb   :  { %4535 = vmatpush3.bf16.msra.mxu0 %v5752_v61 }
 0x4ec   :  { %4536 = vmatprep.subr.bf16.mxu0 %v6353_v0 }
 0x4ed   :  { %4514 = vmatpush3.bf16.msra.mxu1 %v5581_v32  ;;  %v5756_v32 = vpack.c.bf16 %v1302_v23, %v1301_v11 }
 0x4ee   :  { %4515 = vmatprep.subr.bf16.mxu1 %v6353_v0 }
 0x4ef   :  { %4538 = vmatpush3.bf16.msra.mxu0 %v5756_v32 }
 0x4f0   :  { %4539 = vmatprep.subr.bf16.mxu0 %v6353_v0 }
 0x4f1   :  { %4517 = vmatpush3.bf16.msra.mxu1 %v5587_v42  ;;  %v1303_v42 = vld [vmem:[#allocation7 + $0x50] sm:$0xff] }
 0x4f2   :  { %4518 = vmatprep.subr.bf16.mxu1 %v6353_v0 }
 0x4f5   :  { %4520 = vmatpush3.bf16.msra.mxu1 %v5593_v50  ;;  %v1304_v50 = vld [vmem:[#allocation7 + $0x58] sm:$0xff] }
 0x4f6   :  { %4521 = vmatprep.subr.bf16.mxu1 %v6353_v0 }
 0x4f9   :  { %4523 = vmatpush3.bf16.msra.mxu1 %v5599_v60  ;;  %v5759_v60 = vpack.c.bf16 %v1304_v50, %v1303_v42 }
 0x4fa   :  { %4549 = vmatprep.subr.bf16.mxu1 %v5771_v22 }
 0x4fb   :  { %4541 = vmatpush3.bf16.msra.mxu0 %v5759_v60 }
 0x4fc   :  { %3836 = vmatmul.mubr.f32.vlgmr.msra.gmra.mrb[10].mxu1 %v977_v37  ;;  %4542 = vmatprep.subr.bf16.mxu0 %v6353_v0  ;;  %v1431_v37 = vld [vmem:[#allocation8 + $0x190] sm:$0xff] }
 0x4fd   :  { %1525 = vmatprep.mubr.f32.mxu1 %v6352_v8  ;;  %4551 = vmatpush1.bf16.msra.mxu1 %v5773_v13  ;;  %v5806_v57 = vpack.c.bf16 %v1436_v39, %v1431_v37  ;;  %v1403_v37 = vld [vmem:[#allocation8 + $0xb0] sm:$0xff]  ;;  %v1408_v39 = vld [vmem:[#allocation8 + $0xd8] sm:$0xff] }
 0x4fe   :  { %4553 = vmatprep.subr.bf16.mxu1 %v5780_v16  ;;  %v5832_v10 = vpack.c.bf16 %v1408_v39, %v1403_v37  ;;  %v1459_v37 = vld [vmem:[#allocation8 + $0x270] sm:$0xff]  ;;  %v1453_v39 = vld [vmem:[#allocation8 + $0x240] sm:$0xff] }
 0x4ff   :  { %4544 = vmatpush3.bf16.msra.mxu0 %v5763_v41 }
 0x500   :  { %4545 = vmatprep.subr.bf16.mxu0 %v6353_v0 }
 0x501   :  { %4555 = vmatpush1.bf16.msra.mxu1 %v5782_v17 }
 0x502   :  { %4557 = vmatprep.subr.bf16.mxu1 %v5785_v25 }
 0x503   :  { %4547 = vmatpush3.bf16.msra.mxu0 %v5767_v51 }
 0x504   :  { %4581 = vmatprep.subr.bf16.mxu0 %v5775_v27 }
 0x505   :  { %4559 = vmatpush1.bf16.msra.mxu1 %v5788_v36 }
 0x506   :  { %4561 = vmatprep.subr.bf16.mxu1 %v5791_v45 }
 0x509   :  { %4563 = vmatpush1.bf16.msra.mxu1 %v5794_v2 }
 0x50a   :  { %4565 = vmatprep.subr.bf16.mxu1 %v5797_v4 }
 0x50d   :  { %4567 = vmatpush1.bf16.msra.mxu1 %v5800_v28 }
 0x50e   :  { %4569 = vmatprep.subr.bf16.mxu1 %v5803_v29 }
 0x511   :  { %4571 = vmatpush1.bf16.msra.mxu1 %v5806_v57 }
 0x512   :  { %4573 = vmatprep.subr.bf16.mxu1 %v5809_v63 }
 0x515   :  { %4575 = vmatpush1.bf16.msra.mxu1 %v5812_v52 }
 0x5af   :  { %v1124_v11 = vpop.f32.mrb[8].mxu1  ;;  %v1195_v23 = vpop.f32.mrb[10].mxu0 }
 0x5b0   :  { %v1270_v42 = vmax.f32 %v1124_v11, 0.0  ;;  %v3345_v50 = vmul.f32 -1.442695, %v1195_v23  ;;  %v1126_v30 = vpop.f32.mrb[9].mxu1  ;;  %v1197_v33 = vpop.f32.mrb[11].mxu0  ;;  %v1413_v11 = vld [vmem:[#allocation8 + $0x100] sm:$0xff] }
 0x5b1   :  { %v1271_v43 = vmax.f32 %v1126_v30, 0.0  ;;  %v3344_v49 = vmul.f32 -1.442695, %v1197_v33  ;;  %v1418_v23 = vld [vmem:[#allocation8 + $0x128] sm:$0xff] }
 0x5b2   :  { %5113 = vpow2.f32 %v3345_v50  ;;  %v1429_v50 = vld [vmem:[#allocation8 + $0x180] sm:$0xff]  ;;  %v5838_v30 = vpack.c.bf16 %v1418_v23, %v1413_v11  ;;  %v5867_v11 = vpack.c.bf16 %v1458_v46, %v1453_v39  ;;  %v1292_v23 = vld [vmem:[#allocation2 + $0x18] sm:$0xff] }
 0x5b3   :  { %v1272_v59 = vsub.f32 %v1270_v42, %v1271_v43  ;;  %5115 = vpow2.f32 %v3344_v49  ;;  %v1424_v42 = vld [vmem:[#allocation8 + $0x158] sm:$0xff]  ;;  %v1423_v43 = vld [vmem:[#allocation8 + $0x150] sm:$0xff] }
 0x5b4   :  { %v5841_v33 = vpack.c.bf16 %v1429_v50, %v1424_v42  ;;  %v1428_v49 = vld [vmem:[#allocation8 + $0x178] sm:$0xff]  ;;  %v1385_v42 = vld [vmem:[#allocation8 + $0x20] sm:$0xff]  ;;  %v1390_v50 = vld [vmem:[#allocation8 + $0x48] sm:$0xff] }
 0x5b5   :  { %v1435_v46 = vld [vmem:[#allocation8 + $0x1b0] sm:$0xff] }
 0x5bc   :  { %v5114_v58 = vpop.eup %5113 }
 0x5bd   :  { %v5116_v6 = vpop.eup %5115  ;;  %v1283_v12 = vadd.f32 1.0, %v5114_v58  ;;  %v1439_v58 = vld [vmem:[#allocation8 + $0x1d0] sm:$0xff] }
 0x5be   :  { %v1276_v1 = vadd.f32 1.0, %v5116_v6  ;;  %v5844_v6 = vpack.c.bf16 %v1428_v49, %v1423_v43 }
 0x5bf   :  { %5117 = vrcp.f32 %v1283_v12 }
 0x5c0   :  { %5119 = vrcp.f32 %v1276_v1  ;;  %v1433_v1 = vld [vmem:[#allocation8 + $0x1a0] sm:$0xff] }
 0x5c9   :  { %v5118_v18 = vpop.eup %5117 }
 0x5ca   :  { %v5120_v7 = vpop.eup %5119  ;;  %v1286_v14 = vmul.f32 %v5118_v18, %v5700_v3  ;;  %v5825_v3 = vpack.c.bf16 %v1398_v53, %v1393_v47  ;;  %v1438_v18 = vld [vmem:[#allocation8 + $0x1c8] sm:$0xff]  ;;  %v1452_v47 = vld [vmem:[#allocation8 + $0x238] sm:$0xff]  ;;  %v1457_v53 = vld [vmem:[#allocation8 + $0x260] sm:$0xff] }
 0x5cb   :  { %v1279_v31 = vmul.f32 %v5120_v7, %v1272_v59  ;;  %v1434_v59 = vld [vmem:[#allocation8 + $0x1a8] sm:$0xff]  ;;  %v5850_v7 = vpack.c.bf16 %v1438_v18, %v1433_v1  ;;  %v5860_v54 = vpack.c.bf16 %v1457_v53, %v1452_v47  ;;  %v1395_v18 = vld [vmem:[#allocation8 + $0x70] sm:$0xff] }
 0x5cc   :  { %v5847_v12 = vpack.c.bf16 %v1439_v58, %v1434_v59  ;;  %v5874_v58 = vpack.c.bf16 %v1390_v50, %v1385_v42  ;;  %v1415_v53 = vld [vmem:[#allocation8 + $0x110] sm:$0xff]  ;;  %v1445_v50 = vld [vmem:[#allocation8 + $0x200] sm:$0xff] }
 0x5cd   :  { %v5819_v38 = vadd.f32 %v1286_v14, %v1279_v31  ;;  %v5853_v14 = vpack.c.bf16 %v1449_v5, %v1444_v26  ;;  %v5856_v31 = vpack.c.bf16 %v1448_v24, %v1443_v21  ;;  %6358 = vst [vmem:[#allocation20_spill] sm:$0xff] %v5860_v54  ;;  %4577 = vmatprep.subr.bf16.mxu1 %v5860_v54  ;;  %v1400_v26 = vld [vmem:[#allocation8 + $0x98] sm:$0xff]  ;;  %v1405_v21 = vld [vmem:[#allocation8 + $0xc0] sm:$0xff]  ;;  %v1410_v24 = vld [vmem:[#allocation8 + $0xe8] sm:$0xff] }
 0x5ce   :  { %v5877_v5 = vpack.c.bf16 %v1400_v26, %v1395_v18  ;;  %v5887_v47 = vpack.c.bf16 %v1410_v24, %v1405_v21  ;;  %v1460_v18 = vld [vmem:[#allocation8 + $0x278] sm:$0xff] }
 0x5cf   :  { %v1266_v9 = vpop.f32.mrb[10].mxu1  ;;  %3871 = vmatmul.mubr.f32.vlgmr.msra.gmra.mrb[12].mxu0 %v5819_v38 }
 0x5d0   :  { %v1288_v15 = vmax.f32 %v1266_v9, 0.0  ;;  %v3837_v19 = vpop.f32.mrb[11].mxu1  ;;  %4583 = vmatpush1.bf16.msra.mxu0 %v5817_v34  ;;  %1596 = vmatprep.mubr.f32.mxu0 %v6352_v8  ;;  %v1456_v9 = vld [vmem:[#allocation8 + $0x258] sm:$0xff] }
 0x5d1   :  { %4585 = vmatprep.subr.bf16.mxu0 %v5821_v44  ;;  %v5862_v19 = vpack.c.bf16 %v1456_v9, %v1451_v56  ;;  %v1420_v56 = vld [vmem:[#allocation8 + $0x138] sm:$0xff] }
 0x5d2   :  { %1290 = vst [vmem:[#allocation10 + $0x10] sm:$0xff] %v1288_v15  ;;  %v1454_v15 = vld [vmem:[#allocation8 + $0x248] sm:$0xff]  ;;  %v5893_v9 = vpack.c.bf16 %v1420_v56, %v1415_v53 }
 0x5d3   :  { %6359 = vst [vmem:[#allocation21_spill] sm:$0xff] %v5862_v19  ;;  %v5865_v55 = vpack.c.bf16 %v1459_v37, %v1454_v15  ;;  %4579 = vmatpush1.bf16.msra.mxu1 %v5862_v19  ;;  %v1425_v15 = vld [vmem:[#allocation8 + $0x160] sm:$0xff]  ;;  %v1430_v37 = vld [vmem:[#allocation8 + $0x188] sm:$0xff] }
 0x5d4   :  { %4587 = vmatpush1.bf16.msra.mxu0 %v5825_v3  ;;  %4612 = vmatprep.subr.bf16.mxu1 %v6353_v0  ;;  %v5899_v39 = vpack.c.bf16 %v1430_v37, %v1425_v15 }
 0x5d5   :  { %4589 = vmatprep.subr.bf16.mxu0 %v5829_v20 }
 0x5d8   :  { %4591 = vmatpush1.bf16.msra.mxu0 %v5832_v10 }
 0x5d9   :  { %4593 = vmatprep.subr.bf16.mxu0 %v5835_v40 }
 0x5dc   :  { %4595 = vmatpush1.bf16.msra.mxu0 %v5838_v30 }
 0x5dd   :  { %4597 = vmatprep.subr.bf16.mxu0 %v5841_v33 }
 0x5e0   :  { %4599 = vmatpush1.bf16.msra.mxu0 %v5844_v6 }
 0x5e1   :  { %4601 = vmatprep.subr.bf16.mxu0 %v5847_v12 }
 0x5e4   :  { %4603 = vmatpush1.bf16.msra.mxu0 %v5850_v7 }
 0x5e5   :  { %4605 = vmatprep.subr.bf16.mxu0 %v5853_v14 }
 0x5e8   :  { %4607 = vmatpush1.bf16.msra.mxu0 %v5856_v31 }
 0x5e9   :  { %4609 = vmatprep.subr.bf16.mxu0 %v5865_v55 }
 0x5ec   :  { %4611 = vmatpush1.bf16.msra.mxu0 %v5867_v11 }
 0x5ed   :  { %4636 = vmatprep.subr.bf16.mxu0 %v6353_v0 }
 0x6a2   :  { %v1375_v43 = vpop.f32.mrb[12].mxu0 }
 0x6a3   :  { %v1379_v49 = vadd.f32 %v1375_v43, %v1292_v23  ;;  %v3872_v59 = vpop.f32.mrb[13].mxu0  ;;  %v1440_v23 = vld [vmem:[#allocation8 + $0x1d8] sm:$0xff]  ;;  %v1450_v43 = vld [vmem:[#allocation8 + $0x228] sm:$0xff] }
 0x6a4   :  { %v5905_v42 = vpack.c.bf16 %v1440_v23, %v1435_v46  ;;  %v1455_v59 = vld [vmem:[#allocation8 + $0x250] sm:$0xff] }
 0x6a5   :  { %v1380_v1 = vmax.f32 %v1379_v49, 0.0  ;;  %v5911_v49 = vpack.c.bf16 %v1450_v43, %v1445_v50  ;;  %v5917_v26 = vpack.c.bf16 %v1460_v18, %v1455_v59 }
 0x6a7   :  { %1526 = vmatmul.mubr.f32.vlgmr.msra.gmra.mrb[12].mxu1 %v1380_v1  ;;  %1597 = vmatmul.mubr.f32.vlgmr.msra.gmra.mrb[14].mxu0 %v1380_v1 }
 0x6a8   :  { %4614 = vmatpush3.bf16.msra.mxu1 %v5874_v58  ;;  %3905 = vmatprep.mubr.msk.f32.mxu1 %vm5312_vm0, %v6352_v8 }
 0x6a9   :  { %4615 = vmatprep.subr.bf16.mxu1 %v6353_v0  ;;  %4638 = vmatpush3.bf16.msra.mxu0 %v5740_v48 }
 0x6aa   :  { %4639 = vmatprep.subr.bf16.mxu0 %v6353_v0  ;;  %3940 = vmatprep.mubr.msk.f32.mxu0 %vm5312_vm0, %v6352_v8 }
 0x6ac   :  { %4617 = vmatpush3.bf16.msra.mxu1 %v5877_v5 }
 0x6ad   :  { %4618 = vmatprep.subr.bf16.mxu1 %v6353_v0  ;;  %4641 = vmatpush3.bf16.msra.mxu0 %v5744_v62 }
 0x6ae   :  { %4642 = vmatprep.subr.bf16.mxu0 %v6353_v0 }
 0x6b0   :  { %4620 = vmatpush3.bf16.msra.mxu1 %v5887_v47 }
 0x6b1   :  { %4621 = vmatprep.subr.bf16.mxu1 %v6353_v0  ;;  %4644 = vmatpush3.bf16.msra.mxu0 %v5748_v35 }
 0x6b2   :  { %4645 = vmatprep.subr.bf16.mxu0 %v6353_v0 }
 0x6b4   :  { %4623 = vmatpush3.bf16.msra.mxu1 %v5893_v9 }
 0x6b5   :  { %4624 = vmatprep.subr.bf16.mxu1 %v6353_v0  ;;  %4647 = vmatpush3.bf16.msra.mxu0 %v5752_v61 }
 0x6b6   :  { %4648 = vmatprep.subr.bf16.mxu0 %v6353_v0 }
 0x6b8   :  { %4626 = vmatpush3.bf16.msra.mxu1 %v5899_v39 }
 0x6b9   :  { %4627 = vmatprep.subr.bf16.mxu1 %v6353_v0  ;;  %4650 = vmatpush3.bf16.msra.mxu0 %v5756_v32 }
 0x6ba   :  { %4651 = vmatprep.subr.bf16.mxu0 %v6353_v0 }
 0x6bc   :  { %4629 = vmatpush3.bf16.msra.mxu1 %v5905_v42 }
 0x6bd   :  { %4630 = vmatprep.subr.bf16.mxu1 %v6353_v0  ;;  %4653 = vmatpush3.bf16.msra.mxu0 %v5759_v60 }
 0x6be   :  { %4654 = vmatprep.subr.bf16.mxu0 %v6353_v0 }
 0x6c0   :  { %4632 = vmatpush3.bf16.msra.mxu1 %v5911_v49 }
 0x6c1   :  { %4633 = vmatprep.subr.bf16.mxu1 %v6353_v0  ;;  %4656 = vmatpush3.bf16.msra.mxu0 %v5763_v41 }
 0x6c2   :  { %4657 = vmatprep.subr.bf16.mxu0 %v6353_v0 }
 0x6c4   :  { %4635 = vmatpush3.bf16.msra.mxu1 %v5917_v26 }
 0x6c5   :  { %4659 = vmatpush3.bf16.msra.mxu0 %v5767_v51  ;;  %4661 = vmatprep.subr.bf16.mxu1 %v5771_v22 }
 0x6c6   :  { %4693 = vmatprep.subr.bf16.mxu0 %v5775_v27 }
 0x6c7   :  { %3906 = vmatmul.mubr.f32.vlgmr.msra.gmra.mrb[14].mxu1 %v1380_v1 }
 0x6c8   :  { %4663 = vmatpush1.bf16.msra.mxu1 %v5773_v13  ;;  %1928 = vmatprep.mubr.f32.mxu1 %v6352_v8 }
 0x6c9   :  { %4665 = vmatprep.subr.bf16.mxu1 %v5780_v16 }
 0x6cc   :  { %4667 = vmatpush1.bf16.msra.mxu1 %v5782_v17 }
 0x6cd   :  { %4669 = vmatprep.subr.bf16.mxu1 %v5785_v25 }
 0x6d0   :  { %4671 = vmatpush1.bf16.msra.mxu1 %v5788_v36 }
 0x6d1   :  { %4673 = vmatprep.subr.bf16.mxu1 %v5791_v45 }
 0x6d4   :  { %4675 = vmatpush1.bf16.msra.mxu1 %v5794_v2 }
 0x6d5   :  { %4677 = vmatprep.subr.bf16.mxu1 %v5797_v4 }
 0x6d8   :  { %4679 = vmatpush1.bf16.msra.mxu1 %v5800_v28 }
 0x6d9   :  { %4681 = vmatprep.subr.bf16.mxu1 %v5803_v29 }
 0x6dc   :  { %4683 = vmatpush1.bf16.msra.mxu1 %v5806_v57 }
 0x6dd   :  { %4685 = vmatprep.subr.bf16.mxu1 %v5809_v63 }
 0x6e0   :  { %4687 = vmatpush1.bf16.msra.mxu1 %v5812_v52 }
 0x6e1   :  { %4689 = vmatprep.subr.bf16.mxu1 %v5860_v54 }
 0x6e4   :  { %4691 = vmatpush1.bf16.msra.mxu1 %v5862_v19 }
 0x6e5   :  { %4724 = vmatprep.subr.bf16.mxu1 %v6353_v0 }
 0x77a   :  { %v1527_v1 = vpop.f32.mrb[12].mxu1  ;;  %v1598_v21 = vpop.f32.mrb[14].mxu0 }
 0x77b   :  { %v1673_v24 = vmax.f32 %v1527_v1, 0.0  ;;  %v3347_v53 = vmul.f32 -1.442695, %v1598_v21  ;;  %v1529_v56 = vpop.f32.mrb[13].mxu1  ;;  %v1600_v15 = vpop.f32.mrb[15].mxu0 }
 0x77c   :  { %v1674_v37 = vmax.f32 %v1529_v56, 0.0  ;;  %v3346_v46 = vmul.f32 -1.442695, %v1600_v15 }
 0x77d   :  { %5121 = vpow2.f32 %v3347_v53 }
 0x77e   :  { %v1675_v23 = vsub.f32 %v1673_v24, %v1674_v37  ;;  %5123 = vpow2.f32 %v3346_v46 }
 0x787   :  { %v5122_v50 = vpop.eup %5121 }
 0x788   :  { %v5124_v43 = vpop.eup %5123  ;;  %v1686_v59 = vadd.f32 1.0, %v5122_v50  ;;  %v2515_v50 = vld [vmem:[#allocation7 + $0x68] sm:$0xff] }
 0x789   :  { %v1679_v18 = vadd.f32 1.0, %v5124_v43 }
 0x78a   :  { %5125 = vrcp.f32 %v1686_v59  ;;  %v2516_v59 = vld [vmem:[#allocation7 + $0x70] sm:$0xff] }
 0x78b   :  { %5127 = vrcp.f32 %v1679_v18  ;;  %v2517_v18 = vld [vmem:[#allocation7 + $0x78] sm:$0xff] }
 0x794   :  { %v5126_v19 = vpop.eup %5125 }
 0x795   :  { %v5128_v54 = vpop.eup %5127  ;;  %v1689_v52 = vmul.f32 %v5126_v19, %v5819_v38 }
 0x796   :  { %v1682_v63 = vmul.f32 %v5128_v54, %v1675_v23  ;;  %v2514_v23 = vld [vmem:[#allocation7 + $0x60] sm:$0xff] }
 0x797   :  { %v6081_v43 = vpack.c.bf16 %v2515_v50, %v2514_v23 }
 0x798   :  { %v5944_v1 = vadd.f32 %v1689_v52, %v1682_v63  ;;  %v1695_v63 = vld [vmem:[#allocation2 + $0x20] sm:$0xff] }
 0x79a   :  { %v1669_v21 = vpop.f32.mrb[14].mxu1  ;;  %3941 = vmatmul.mubr.f32.vlgmr.msra.gmra.mrb[16].mxu0 %v5944_v1 }
 0x79b   :  { %v1691_v56 = vmax.f32 %v1669_v21, 0.0  ;;  %v3907_v53 = vpop.f32.mrb[15].mxu1  ;;  %4695 = vmatpush1.bf16.msra.mxu0 %v5817_v34  ;;  %1999 = vmatprep.mubr.f32.mxu0 %v6352_v8  ;;  %v2591_v21 = vld [vmem:[#allocation8 + $0x8] sm:$0xff] }
 0x79c   :  { %4697 = vmatprep.subr.bf16.mxu0 %v5821_v44  ;;  %v2590_v53 = vld [vmem:[#allocation8] sm:$0xff] }
 0x79d   :  { %1693 = vst [vmem:[#allocation10 + $0x18] sm:$0xff] %v1691_v56  ;;  %v2596_v56 = vld [vmem:[#allocation8 + $0x30] sm:$0xff] }
 0x79f   :  { %4699 = vmatpush1.bf16.msra.mxu0 %v5825_v3 }
 0x7a0   :  { %4701 = vmatprep.subr.bf16.mxu0 %v5829_v20 }
 0x7a3   :  { %4703 = vmatpush1.bf16.msra.mxu0 %v5832_v10 }
 0x7a4   :  { %4705 = vmatprep.subr.bf16.mxu0 %v5835_v40 }
 0x7a7   :  { %4707 = vmatpush1.bf16.msra.mxu0 %v5838_v30 }
 0x7a8   :  { %4709 = vmatprep.subr.bf16.mxu0 %v5841_v33 }
 0x7ab   :  { %4711 = vmatpush1.bf16.msra.mxu0 %v5844_v6 }
 0x7ac   :  { %4713 = vmatprep.subr.bf16.mxu0 %v5847_v12 }
 0x7af   :  { %4715 = vmatpush1.bf16.msra.mxu0 %v5850_v7 }
 0x7b0   :  { %4717 = vmatprep.subr.bf16.mxu0 %v5853_v14 }
 0x7b3   :  { %4719 = vmatpush1.bf16.msra.mxu0 %v5856_v31 }
 0x7b4   :  { %4721 = vmatprep.subr.bf16.mxu0 %v5865_v55 }
 0x7b7   :  { %4723 = vmatpush1.bf16.msra.mxu0 %v5867_v11 }
 0x7b8   :  { %4748 = vmatprep.subr.bf16.mxu0 %v6353_v0 }
 0x86d   :  { %v1778_v52 = vpop.f32.mrb[16].mxu0 }
 0x86e   :  { %v1782_v38 = vadd.f32 %v1778_v52, %v1695_v63  ;;  %v3942_v54 = vpop.f32.mrb[17].mxu0  ;;  %v6089_v63 = vpack.c.bf16 %v2596_v56, %v2591_v21  ;;  %v2595_v52 = vld [vmem:[#allocation8 + $0x28] sm:$0xff] }
 0x86f   :  { %v2598_v54 = vld [vmem:[#allocation8 + $0x40] sm:$0xff] }
 0x870   :  { %v1783_v19 = vmax.f32 %v1782_v38, 0.0  ;;  %v2593_v38 = vld [vmem:[#allocation8 + $0x18] sm:$0xff] }
 0x872   :  { %1929 = vmatmul.mubr.f32.vlgmr.msra.gmra.mrb[16].mxu1 %v1783_v19  ;;  %2000 = vmatmul.mubr.f32.vlgmr.msra.gmra.mrb[18].mxu0 %v1783_v19 }
 0x873   :  { %4726 = vmatpush3.bf16.msra.mxu1 %v5874_v58  ;;  %3975 = vmatprep.mubr.msk.f32.mxu1 %vm5312_vm0, %v6352_v8 }
 0x874   :  { %4727 = vmatprep.subr.bf16.mxu1 %v6353_v0  ;;  %4750 = vmatpush3.bf16.msra.mxu0 %v5740_v48  ;;  %v6360_v48 = vld [vmem:[#allocation18_spill] sm:$0xff] }
 0x875   :  { %4751 = vmatprep.subr.bf16.mxu0 %v6353_v0  ;;  %4010 = vmatprep.mubr.msk.f32.mxu0 %vm5312_vm0, %v6352_v8 }
 0x877   :  { %4729 = vmatpush3.bf16.msra.mxu1 %v5877_v5 }
 0x878   :  { %4730 = vmatprep.subr.bf16.mxu1 %v6353_v0  ;;  %4753 = vmatpush3.bf16.msra.mxu0 %v5744_v62  ;;  %v6361_v62 = vld [vmem:[#allocation19_spill] sm:$0xff] }
 0x879   :  { %4754 = vmatprep.subr.bf16.mxu0 %v6353_v0 }
 0x87b   :  { %4732 = vmatpush3.bf16.msra.mxu1 %v5887_v47 }
 0x87c   :  { %4733 = vmatprep.subr.bf16.mxu1 %v6353_v0  ;;  %4756 = vmatpush3.bf16.msra.mxu0 %v5748_v35  ;;  %v6362_v35 = vld [vmem:[#allocation20_spill] sm:$0xff] }
 0x87d   :  { %4757 = vmatprep.subr.bf16.mxu0 %v6353_v0 }
 0x87f   :  { %4735 = vmatpush3.bf16.msra.mxu1 %v5893_v9 }
 0x880   :  { %4736 = vmatprep.subr.bf16.mxu1 %v6353_v0  ;;  %4759 = vmatpush3.bf16.msra.mxu0 %v5752_v61  ;;  %v6363_v61 = vld [vmem:[#allocation21_spill] sm:$0xff] }
 0x881   :  { %4760 = vmatprep.subr.bf16.mxu0 %v6353_v0 }
 0x883   :  { %4738 = vmatpush3.bf16.msra.mxu1 %v5899_v39 }
 0x884   :  { %4739 = vmatprep.subr.bf16.mxu1 %v6353_v0  ;;  %4762 = vmatpush3.bf16.msra.mxu0 %v5756_v32 }
 0x885   :  { %4763 = vmatprep.subr.bf16.mxu0 %v6353_v0 }
 0x887   :  { %4741 = vmatpush3.bf16.msra.mxu1 %v5905_v42 }
 0x888   :  { %4742 = vmatprep.subr.bf16.mxu1 %v6353_v0  ;;  %4765 = vmatpush3.bf16.msra.mxu0 %v5759_v60 }
 0x889   :  { %4766 = vmatprep.subr.bf16.mxu0 %v6353_v0 }
 0x88b   :  { %4744 = vmatpush3.bf16.msra.mxu1 %v5911_v49 }
 0x88c   :  { %4745 = vmatprep.subr.bf16.mxu1 %v6353_v0  ;;  %4768 = vmatpush3.bf16.msra.mxu0 %v5763_v41 }
 0x88d   :  { %4769 = vmatprep.subr.bf16.mxu0 %v6353_v0 }
 0x88f   :  { %4747 = vmatpush3.bf16.msra.mxu1 %v5917_v26 }
 0x890   :  { %4771 = vmatpush3.bf16.msra.mxu0 %v5767_v51  ;;  %4773 = vmatprep.subr.bf16.mxu1 %v5771_v22 }
 0x891   :  { %4805 = vmatprep.subr.bf16.mxu0 %v5775_v27 }
 0x892   :  { %3976 = vmatmul.mubr.f32.vlgmr.msra.gmra.mrb[18].mxu1 %v1783_v19  ;;  %v6091_v19 = vpack.c.bf16 %v2595_v52, %v2590_v53 }
 0x893   :  { %4775 = vmatpush1.bf16.msra.mxu1 %v5773_v13  ;;  %2331 = vmatprep.mubr.f32.mxu1 %v6352_v8 }
 0x894   :  { %4777 = vmatprep.subr.bf16.mxu1 %v5780_v16 }
 0x897   :  { %4779 = vmatpush1.bf16.msra.mxu1 %v5782_v17 }
 0x898   :  { %4781 = vmatprep.subr.bf16.mxu1 %v5785_v25 }
 0x89b   :  { %4783 = vmatpush1.bf16.msra.mxu1 %v5788_v36 }
 0x89c   :  { %4785 = vmatprep.subr.bf16.mxu1 %v5791_v45 }
 0x89f   :  { %4787 = vmatpush1.bf16.msra.mxu1 %v5794_v2 }
 0x8a0   :  { %4789 = vmatprep.subr.bf16.mxu1 %v5797_v4 }
 0x8a3   :  { %4791 = vmatpush1.bf16.msra.mxu1 %v5800_v28 }
 0x8a4   :  { %4793 = vmatprep.subr.bf16.mxu1 %v5803_v29 }
 0x8a7   :  { %4795 = vmatpush1.bf16.msra.mxu1 %v5806_v57 }
 0x8a8   :  { %4797 = vmatprep.subr.bf16.mxu1 %v6360_v48  ;;  %v6093_v48 = vpack.c.bf16 %v2598_v54, %v2593_v38 }
 0x8ab   :  { %4799 = vmatpush1.bf16.msra.mxu1 %v6361_v62  ;;  %v2601_v62 = vld [vmem:[#allocation8 + $0x58] sm:$0xff] }
 0x8ac   :  { %4801 = vmatprep.subr.bf16.mxu1 %v6362_v35  ;;  %v2606_v35 = vld [vmem:[#allocation8 + $0x80] sm:$0xff] }
 0x8af   :  { %4803 = vmatpush1.bf16.msra.mxu1 %v6363_v61  ;;  %v2600_v61 = vld [vmem:[#allocation8 + $0x50] sm:$0xff] }
 0x8b0   :  { %4836 = vmatprep.subr.bf16.mxu1 %v6353_v0 }
 0x945   :  { %v1930_v32 = vpop.f32.mrb[16].mxu1  ;;  %v2001_v60 = vpop.f32.mrb[18].mxu0 }
 0x946   :  { %v2076_v41 = vmax.f32 %v1930_v32, 0.0  ;;  %v3349_v51 = vmul.f32 -1.442695, %v2001_v60  ;;  %v1932_v22 = vpop.f32.mrb[17].mxu1  ;;  %v2003_v13 = vpop.f32.mrb[19].mxu0  ;;  %v2605_v32 = vld [vmem:[#allocation8 + $0x78] sm:$0xff]  ;;  %v6098_v60 = vpack.c.bf16 %v2606_v35, %v2601_v62 }
 0x947   :  { %v2077_v27 = vmax.f32 %v1932_v22, 0.0  ;;  %v3348_v16 = vmul.f32 -1.442695, %v2003_v13  ;;  %v2616_v22 = vld [vmem:[#allocation8 + $0xd0] sm:$0xff]  ;;  %v2597_v35 = vld [vmem:[#allocation8 + $0x38] sm:$0xff] }
 0x948   :  { %5129 = vpow2.f32 %v3349_v51  ;;  %v2611_v51 = vld [vmem:[#allocation8 + $0xa8] sm:$0xff]  ;;  %v2592_v62 = vld [vmem:[#allocation8 + $0x10] sm:$0xff] }
 0x949   :  { %v2078_v17 = vsub.f32 %v2076_v41, %v2077_v27  ;;  %5131 = vpow2.f32 %v3348_v16  ;;  %v6100_v41 = vpack.c.bf16 %v2605_v32, %v2600_v61  ;;  %v6103_v13 = vpack.c.bf16 %v2616_v22, %v2611_v51  ;;  %v2610_v27 = vld [vmem:[#allocation8 + $0xa0] sm:$0xff]  ;;  %v2615_v16 = vld [vmem:[#allocation8 + $0xc8] sm:$0xff]  ;;  %v2608_v22 = vld [vmem:[#allocation8 + $0x90] sm:$0xff] }
 0x94a   :  { %v2603_v51 = vld [vmem:[#allocation8 + $0x68] sm:$0xff] }
 0x952   :  { %v5130_v25 = vpop.eup %5129 }
 0x953   :  { %v5132_v36 = vpop.eup %5131  ;;  %v2089_v45 = vadd.f32 1.0, %v5130_v25  ;;  %v2621_v25 = vld [vmem:[#allocation8 + $0xf8] sm:$0xff] }
 0x954   :  { %v2082_v2 = vadd.f32 1.0, %v5132_v36  ;;  %v2626_v36 = vld [vmem:[#allocation8 + $0x120] sm:$0xff] }
 0x955   :  { %5133 = vrcp.f32 %v2089_v45  ;;  %v6109_v45 = vpack.c.bf16 %v2626_v36, %v2621_v25  ;;  %v6139_v36 = vpack.c.bf16 %v2608_v22, %v2603_v51  ;;  %v2652_v51 = vld [vmem:[#allocation8 + $0x1f0] sm:$0xff]  ;;  %v2657_v22 = vld [vmem:[#allocation8 + $0x218] sm:$0xff] }
 0x956   :  { %5135 = vrcp.f32 %v2082_v2  ;;  %v2620_v2 = vld [vmem:[#allocation8 + $0xf0] sm:$0xff] }
 0x95f   :  { %v5134_v4 = vpop.eup %5133 }
 0x960   :  { %v5136_v28 = vpop.eup %5135  ;;  %v2092_v29 = vmul.f32 %v5134_v4, %v5944_v1  ;;  %v6085_v1 = vpack.c.bf16 %v2517_v18, %v2516_v59  ;;  %v2625_v4 = vld [vmem:[#allocation8 + $0x118] sm:$0xff] }
 0x961   :  { %v2085_v57 = vmul.f32 %v5136_v28, %v2078_v17  ;;  %v6106_v17 = vpack.c.bf16 %v2615_v16, %v2610_v27  ;;  %v2631_v28 = vld [vmem:[#allocation8 + $0x148] sm:$0xff]  ;;  %v6135_v16 = vpack.c.bf16 %v2597_v35, %v2592_v62  ;;  %v2653_v62 = vld [vmem:[#allocation8 + $0x1f8] sm:$0xff]  ;;  %v2658_v35 = vld [vmem:[#allocation8 + $0x220] sm:$0xff] }
 0x963   :  { %v6018_v24 = vadd.f32 %v2092_v29, %v2085_v57  ;;  %v2636_v29 = vld [vmem:[#allocation8 + $0x170] sm:$0xff]  ;;  %v6112_v57 = vpack.c.bf16 %v2625_v4, %v2620_v2  ;;  %v2602_v2 = vld [vmem:[#allocation8 + $0x60] sm:$0xff]  ;;  %v2607_v4 = vld [vmem:[#allocation8 + $0x88] sm:$0xff] }
 0x965   :  { %v2072_v15 = vpop.f32.mrb[18].mxu1  ;;  %4011 = vmatmul.mubr.f32.vlgmr.msra.gmra.mrb[20].mxu0 %v6018_v24 }
 0x966   :  { %v2094_v37 = vmax.f32 %v2072_v15, 0.0  ;;  %v3977_v46 = vpop.f32.mrb[19].mxu1  ;;  %4807 = vmatpush1.bf16.msra.mxu0 %v5817_v34  ;;  %2402 = vmatprep.mubr.f32.mxu0 %v6352_v8  ;;  %v2098_v34 = vld [vmem:[#allocation2 + $0x28] sm:$0xff]  ;;  %v6115_v15 = vpack.c.bf16 %v2636_v29, %v2631_v28  ;;  %v2613_v28 = vld [vmem:[#allocation8 + $0xb8] sm:$0xff] }
 0x967   :  { %4809 = vmatprep.subr.bf16.mxu0 %v5821_v44  ;;  %v2635_v46 = vld [vmem:[#allocation8 + $0x168] sm:$0xff]  ;;  %v2618_v29 = vld [vmem:[#allocation8 + $0xe0] sm:$0xff] }
 0x968   :  { %2096 = vst [vmem:[#allocation10 + $0x20] sm:$0xff] %v2094_v37  ;;  %v2630_v37 = vld [vmem:[#allocation8 + $0x140] sm:$0xff] }
 0x96a   :  { %4811 = vmatpush1.bf16.msra.mxu0 %v5825_v3 }
 0x96b   :  { %4813 = vmatprep.subr.bf16.mxu0 %v5829_v20 }
 0x96e   :  { %4815 = vmatpush1.bf16.msra.mxu0 %v5832_v10 }
 0x96f   :  { %4817 = vmatprep.subr.bf16.mxu0 %v5835_v40  ;;  %v2502_v40 = vld [vmem:[#allocation7] sm:$0xff] }
 0x972   :  { %4819 = vmatpush1.bf16.msra.mxu0 %v5838_v30  ;;  %v2503_v30 = vld [vmem:[#allocation7 + $0x8] sm:$0xff] }
 0x973   :  { %4821 = vmatprep.subr.bf16.mxu0 %v5841_v33  ;;  %v6058_v33 = vpack.c.bf16 %v2503_v30, %v2502_v40  ;;  %v2645_v40 = vld [vmem:[#allocation8 + $0x1b8] sm:$0xff]  ;;  %v2651_v30 = vld [vmem:[#allocation8 + $0x1e8] sm:$0xff] }
 0x976   :  { %4823 = vmatpush1.bf16.msra.mxu0 %v5844_v6  ;;  %v2504_v6 = vld [vmem:[#allocation7 + $0x10] sm:$0xff] }
 0x977   :  { %4825 = vmatprep.subr.bf16.mxu0 %v5847_v12  ;;  %v2505_v12 = vld [vmem:[#allocation7 + $0x18] sm:$0xff] }
 0x97a   :  { %4827 = vmatpush1.bf16.msra.mxu0 %v5850_v7  ;;  %v6062_v7 = vpack.c.bf16 %v2505_v12, %v2504_v6  ;;  %v2656_v6 = vld [vmem:[#allocation8 + $0x210] sm:$0xff] }
 0x97b   :  { %4829 = vmatprep.subr.bf16.mxu0 %v5853_v14  ;;  %v2506_v14 = vld [vmem:[#allocation7 + $0x20] sm:$0xff] }
 0x97e   :  { %4831 = vmatpush1.bf16.msra.mxu0 %v5856_v31  ;;  %v2507_v31 = vld [vmem:[#allocation7 + $0x28] sm:$0xff] }
 0x97f   :  { %4833 = vmatprep.subr.bf16.mxu0 %v5865_v55  ;;  %v6066_v55 = vpack.c.bf16 %v2507_v31, %v2506_v14  ;;  %v6127_v14 = vpack.c.bf16 %v2656_v6, %v2651_v30  ;;  %v2650_v31 = vld [vmem:[#allocation8 + $0x1e0] sm:$0xff]  ;;  %v2623_v30 = vld [vmem:[#allocation8 + $0x108] sm:$0xff]  ;;  %v2628_v6 = vld [vmem:[#allocation8 + $0x130] sm:$0xff] }
 0x982   :  { %4835 = vmatpush1.bf16.msra.mxu0 %v5867_v11  ;;  %v2508_v11 = vld [vmem:[#allocation7 + $0x30] sm:$0xff] }
 0x983   :  { %4860 = vmatprep.subr.bf16.mxu0 %v6353_v0 }
 0xa38   :  { %v2181_v44 = vpop.f32.mrb[20].mxu0 }
 0xa39   :  { %v2185_v3 = vadd.f32 %v2181_v44, %v2098_v34  ;;  %v4012_v20 = vpop.f32.mrb[21].mxu0  ;;  %v2641_v34 = vld [vmem:[#allocation8 + $0x198] sm:$0xff]  ;;  %v2646_v44 = vld [vmem:[#allocation8 + $0x1c0] sm:$0xff] }
 0xa3a   :  { %v6121_v20 = vpack.c.bf16 %v2646_v44, %v2641_v34  ;;  %v6147_v44 = vpack.c.bf16 %v2618_v29, %v2613_v28  ;;  %v2660_v29 = vld [vmem:[#allocation8 + $0x230] sm:$0xff] }
 0xa3b   :  { %v2186_v10 = vmax.f32 %v2185_v3, 0.0  ;;  %v6118_v3 = vpack.c.bf16 %v2635_v46, %v2630_v37 }
 0xa3d   :  { %2332 = vmatmul.mubr.f32.vlgmr.msra.gmra.mrb[20].mxu1 %v2186_v10  ;;  %2403 = vmatmul.mubr.f32.vlgmr.msra.gmra.mrb[22].mxu0 %v2186_v10 }
 0xa3e   :  { %4838 = vmatpush3.bf16.msra.mxu1 %v5874_v58  ;;  %4045 = vmatprep.mubr.msk.f32.mxu1 %vm5312_vm0, %v6352_v8  ;;  %v2509_v58 = vld [vmem:[#allocation7 + $0x38] sm:$0xff] }
 0xa3f   :  { %4839 = vmatprep.subr.bf16.mxu1 %v6353_v0  ;;  %4080 = vmatprep.mubr.msk.f32.mxu0 %vm5312_vm0, %v6352_v8 }
 0xa40   :  { %4862 = vmatpush3.bf16.msra.mxu0 %v6058_v33 }
 0xa41   :  { %4863 = vmatprep.subr.bf16.mxu0 %v6353_v0 }
 0xa42   :  { %4841 = vmatpush3.bf16.msra.mxu1 %v5877_v5  ;;  %v6070_v5 = vpack.c.bf16 %v2509_v58, %v2508_v11  ;;  %v2655_v11 = vld [vmem:[#allocation8 + $0x208] sm:$0xff] }
 0xa43   :  { %4842 = vmatprep.subr.bf16.mxu1 %v6353_v0  ;;  %v6130_v58 = vpack.c.bf16 %v2655_v11, %v2650_v31  ;;  %v6153_v11 = vpack.c.bf16 %v2628_v6, %v2623_v30  ;;  %v2667_v30 = vld [vmem:[#allocation8 + $0x268] sm:$0xff] }
 0xa44   :  { %4865 = vmatpush3.bf16.msra.mxu0 %v6062_v7 }
 0xa45   :  { %4866 = vmatprep.subr.bf16.mxu0 %v6353_v0 }
 0xa46   :  { %4844 = vmatpush3.bf16.msra.mxu1 %v5887_v47  ;;  %v2510_v47 = vld [vmem:[#allocation7 + $0x40] sm:$0xff] }
 0xa47   :  { %4845 = vmatprep.subr.bf16.mxu1 %v6353_v0 }
 0xa48   :  { %4868 = vmatpush3.bf16.msra.mxu0 %v6066_v55 }
 0xa49   :  { %4869 = vmatprep.subr.bf16.mxu0 %v6353_v0 }
 0xa4a   :  { %4847 = vmatpush3.bf16.msra.mxu1 %v5893_v9  ;;  %v2511_v9 = vld [vmem:[#allocation7 + $0x48] sm:$0xff] }
 0xa4b   :  { %4848 = vmatprep.subr.bf16.mxu1 %v6353_v0 }
 0xa4c   :  { %4871 = vmatpush3.bf16.msra.mxu0 %v6070_v5 }
 0xa4d   :  { %4872 = vmatprep.subr.bf16.mxu0 %v6353_v0 }
 0xa4e   :  { %4850 = vmatpush3.bf16.msra.mxu1 %v5899_v39  ;;  %v6074_v39 = vpack.c.bf16 %v2511_v9, %v2510_v47 }
 0xa4f   :  { %4851 = vmatprep.subr.bf16.mxu1 %v6353_v0 }
 0xa50   :  { %4874 = vmatpush3.bf16.msra.mxu0 %v6074_v39 }
 0xa51   :  { %4875 = vmatprep.subr.bf16.mxu0 %v6353_v0 }
 0xa52   :  { %4853 = vmatpush3.bf16.msra.mxu1 %v5905_v42  ;;  %v2512_v42 = vld [vmem:[#allocation7 + $0x50] sm:$0xff] }
 0xa53   :  { %4854 = vmatprep.subr.bf16.mxu1 %v6353_v0 }
 0xa56   :  { %4856 = vmatpush3.bf16.msra.mxu1 %v5911_v49  ;;  %v2513_v49 = vld [vmem:[#allocation7 + $0x58] sm:$0xff] }
 0xa57   :  { %4857 = vmatprep.subr.bf16.mxu1 %v6353_v0 }
 0xa5a   :  { %4859 = vmatpush3.bf16.msra.mxu1 %v5917_v26  ;;  %v6077_v26 = vpack.c.bf16 %v2513_v49, %v2512_v42 }
 0xa5b   :  { %4885 = vmatprep.subr.bf16.mxu1 %v6089_v63 }
 0xa5c   :  { %4877 = vmatpush3.bf16.msra.mxu0 %v6077_v26 }
 0xa5d   :  { %4046 = vmatmul.mubr.f32.vlgmr.msra.gmra.mrb[22].mxu1 %v2186_v10  ;;  %4878 = vmatprep.subr.bf16.mxu0 %v6353_v0  ;;  %v2640_v10 = vld [vmem:[#allocation8 + $0x190] sm:$0xff] }
 0xa5e   :  { %2734 = vmatprep.mubr.f32.mxu1 %v6352_v8  ;;  %4887 = vmatpush1.bf16.msra.mxu1 %v6091_v19  ;;  %v6124_v12 = vpack.c.bf16 %v2645_v40, %v2640_v10  ;;  %v2612_v10 = vld [vmem:[#allocation8 + $0xb0] sm:$0xff]  ;;  %v2617_v40 = vld [vmem:[#allocation8 + $0xd8] sm:$0xff] }
 0xa5f   :  { %4889 = vmatprep.subr.bf16.mxu1 %v6098_v60  ;;  %v6150_v31 = vpack.c.bf16 %v2617_v40, %v2612_v10  ;;  %v2668_v10 = vld [vmem:[#allocation8 + $0x270] sm:$0xff]  ;;  %v2662_v40 = vld [vmem:[#allocation8 + $0x240] sm:$0xff] }
 0xa60   :  { %4880 = vmatpush3.bf16.msra.mxu0 %v6081_v43 }
 0xa61   :  { %4881 = vmatprep.subr.bf16.mxu0 %v6353_v0 }
 0xa62   :  { %4891 = vmatpush1.bf16.msra.mxu1 %v6100_v41 }
 0xa63   :  { %4893 = vmatprep.subr.bf16.mxu1 %v6103_v13 }
 0xa64   :  { %4883 = vmatpush3.bf16.msra.mxu0 %v6085_v1 }
 0xa65   :  { %4917 = vmatprep.subr.bf16.mxu0 %v6093_v48 }
 0xa66   :  { %4895 = vmatpush1.bf16.msra.mxu1 %v6106_v17 }
 0xa67   :  { %4897 = vmatprep.subr.bf16.mxu1 %v6109_v45 }
 0xa6a   :  { %4899 = vmatpush1.bf16.msra.mxu1 %v6112_v57 }
 0xa6b   :  { %4901 = vmatprep.subr.bf16.mxu1 %v6115_v15 }
 0xa6e   :  { %4903 = vmatpush1.bf16.msra.mxu1 %v6118_v3 }
 0xa6f   :  { %4905 = vmatprep.subr.bf16.mxu1 %v6121_v20 }
 0xa72   :  { %4907 = vmatpush1.bf16.msra.mxu1 %v6124_v12 }
 0xa73   :  { %4909 = vmatprep.subr.bf16.mxu1 %v6127_v14 }
 0xa76   :  { %4911 = vmatpush1.bf16.msra.mxu1 %v6130_v58 }
 0xb10   :  { %v2333_v47 = vpop.f32.mrb[20].mxu1  ;;  %v2404_v9 = vpop.f32.mrb[22].mxu0 }
 0xb11   :  { %v2479_v42 = vmax.f32 %v2333_v47, 0.0  ;;  %v3351_v49 = vmul.f32 -1.442695, %v2404_v9  ;;  %v2335_v23 = vpop.f32.mrb[21].mxu1  ;;  %v2406_v50 = vpop.f32.mrb[23].mxu0  ;;  %v2622_v47 = vld [vmem:[#allocation8 + $0x100] sm:$0xff] }
 0xb12   :  { %v2480_v59 = vmax.f32 %v2335_v23, 0.0  ;;  %v3350_v18 = vmul.f32 -1.442695, %v2406_v50  ;;  %v2627_v9 = vld [vmem:[#allocation8 + $0x128] sm:$0xff] }
 0xb13   :  { %5137 = vpow2.f32 %v3351_v49  ;;  %v2638_v49 = vld [vmem:[#allocation8 + $0x180] sm:$0xff]  ;;  %v6156_v23 = vpack.c.bf16 %v2627_v9, %v2622_v47  ;;  %v6185_v47 = vpack.c.bf16 %v2667_v30, %v2662_v40  ;;  %v2501_v9 = vld [vmem:[#allocation2 + $0x30] sm:$0xff]  ;;  %v2649_v40 = vld [vmem:[#allocation8 + $0x1d8] sm:$0xff] }
 0xb14   :  { %v2481_v21 = vsub.f32 %v2479_v42, %v2480_v59  ;;  %5139 = vpow2.f32 %v3350_v18  ;;  %v2633_v42 = vld [vmem:[#allocation8 + $0x158] sm:$0xff]  ;;  %v2632_v59 = vld [vmem:[#allocation8 + $0x150] sm:$0xff] }
 0xb15   :  { %v6159_v50 = vpack.c.bf16 %v2638_v49, %v2633_v42  ;;  %v2637_v18 = vld [vmem:[#allocation8 + $0x178] sm:$0xff]  ;;  %v2594_v42 = vld [vmem:[#allocation8 + $0x20] sm:$0xff]  ;;  %v2599_v49 = vld [vmem:[#allocation8 + $0x48] sm:$0xff] }
 0xb1d   :  { %v5138_v56 = vpop.eup %5137 }
 0xb1e   :  { %v5140_v53 = vpop.eup %5139  ;;  %v2492_v52 = vadd.f32 1.0, %v5138_v56  ;;  %v2648_v56 = vld [vmem:[#allocation8 + $0x1d0] sm:$0xff] }
 0xb1f   :  { %v2485_v38 = vadd.f32 1.0, %v5140_v53  ;;  %v6162_v53 = vpack.c.bf16 %v2637_v18, %v2632_v59 }
 0xb20   :  { %5141 = vrcp.f32 %v2492_v52 }
 0xb21   :  { %5143 = vrcp.f32 %v2485_v38  ;;  %v2642_v38 = vld [vmem:[#allocation8 + $0x1a0] sm:$0xff] }
 0xb2a   :  { %v5142_v54 = vpop.eup %5141 }
 0xb2b   :  { %v5144_v61 = vpop.eup %5143  ;;  %v2495_v32 = vmul.f32 %v5142_v54, %v6018_v24  ;;  %v6143_v24 = vpack.c.bf16 %v2607_v4, %v2602_v2  ;;  %v2647_v54 = vld [vmem:[#allocation8 + $0x1c8] sm:$0xff]  ;;  %v2661_v2 = vld [vmem:[#allocation8 + $0x238] sm:$0xff]  ;;  %v2666_v4 = vld [vmem:[#allocation8 + $0x260] sm:$0xff] }
 0xb2c   :  { %v2488_v27 = vmul.f32 %v5144_v61, %v2481_v21  ;;  %v2643_v21 = vld [vmem:[#allocation8 + $0x1a8] sm:$0xff]  ;;  %v6168_v61 = vpack.c.bf16 %v2647_v54, %v2642_v38  ;;  %v6178_v28 = vpack.c.bf16 %v2666_v4, %v2661_v2  ;;  %v2604_v54 = vld [vmem:[#allocation8 + $0x70] sm:$0xff] }
 0xb2d   :  { %v6165_v52 = vpack.c.bf16 %v2648_v56, %v2643_v21  ;;  %v6192_v56 = vpack.c.bf16 %v2599_v49, %v2594_v42  ;;  %v2624_v4 = vld [vmem:[#allocation8 + $0x110] sm:$0xff]  ;;  %v2669_v49 = vld [vmem:[#allocation8 + $0x278] sm:$0xff] }
 0xb2e   :  { %v6137_v25 = vadd.f32 %v2495_v32, %v2488_v27  ;;  %v6171_v32 = vpack.c.bf16 %v2658_v35, %v2653_v62  ;;  %v6174_v27 = vpack.c.bf16 %v2657_v22, %v2652_v51  ;;  %4913 = vmatprep.subr.bf16.mxu1 %v6178_v28  ;;  %v2609_v62 = vld [vmem:[#allocation8 + $0x98] sm:$0xff]  ;;  %v2614_v51 = vld [vmem:[#allocation8 + $0xc0] sm:$0xff]  ;;  %v2619_v22 = vld [vmem:[#allocation8 + $0xe8] sm:$0xff] }
 0xb2f   :  { %v6195_v35 = vpack.c.bf16 %v2609_v62, %v2604_v54  ;;  %v6205_v2 = vpack.c.bf16 %v2619_v22, %v2614_v51 }
 0xb30   :  { %v2475_v37 = vpop.f32.mrb[22].mxu1  ;;  %4081 = vmatmul.mubr.f32.vlgmr.msra.gmra.mrb[24].mxu0 %v6137_v25 }
 0xb31   :  { %v2497_v46 = vmax.f32 %v2475_v37, 0.0  ;;  %v4047_v34 = vpop.f32.mrb[23].mxu1  ;;  %4919 = vmatpush1.bf16.msra.mxu0 %v6135_v16  ;;  %2805 = vmatprep.mubr.f32.mxu0 %v6352_v8  ;;  %v2665_v37 = vld [vmem:[#allocation8 + $0x258] sm:$0xff] }
 0xb32   :  { %4921 = vmatprep.subr.bf16.mxu0 %v6139_v36  ;;  %v6180_v34 = vpack.c.bf16 %v2665_v37, %v2660_v29  ;;  %v2629_v29 = vld [vmem:[#allocation8 + $0x138] sm:$0xff]  ;;  %v2634_v37 = vld [vmem:[#allocation8 + $0x160] sm:$0xff] }
 0xb33   :  { %2499 = vst [vmem:[#allocation10 + $0x28] sm:$0xff] %v2497_v46  ;;  %v2663_v46 = vld [vmem:[#allocation8 + $0x248] sm:$0xff] }
 0xb34   :  { %v6183_v6 = vpack.c.bf16 %v2668_v10, %v2663_v46  ;;  %4915 = vmatpush1.bf16.msra.mxu1 %v6180_v34  ;;  %v2639_v46 = vld [vmem:[#allocation8 + $0x188] sm:$0xff] }
 0xb35   :  { %4923 = vmatpush1.bf16.msra.mxu0 %v6143_v24  ;;  %4948 = vmatprep.subr.bf16.mxu1 %v6353_v0  ;;  %v6217_v10 = vpack.c.bf16 %v2639_v46, %v2634_v37 }
 0xb36   :  { %4925 = vmatprep.subr.bf16.mxu0 %v6147_v44 }
 0xb39   :  { %4927 = vmatpush1.bf16.msra.mxu0 %v6150_v31 }
 0xb3a   :  { %4929 = vmatprep.subr.bf16.mxu0 %v6153_v11 }
 0xb3d   :  { %4931 = vmatpush1.bf16.msra.mxu0 %v6156_v23 }
 0xb3e   :  { %4933 = vmatprep.subr.bf16.mxu0 %v6159_v50 }
 0xb41   :  { %4935 = vmatpush1.bf16.msra.mxu0 %v6162_v53 }
 0xb42   :  { %4937 = vmatprep.subr.bf16.mxu0 %v6165_v52 }
 0xb45   :  { %4939 = vmatpush1.bf16.msra.mxu0 %v6168_v61 }
 0xb46   :  { %4941 = vmatprep.subr.bf16.mxu0 %v6171_v32 }
 0xb49   :  { %4943 = vmatpush1.bf16.msra.mxu0 %v6174_v27 }
 0xb4a   :  { %4945 = vmatprep.subr.bf16.mxu0 %v6183_v6 }
 0xb4d   :  { %4947 = vmatpush1.bf16.msra.mxu0 %v6185_v47 }
 0xb4e   :  { %4972 = vmatprep.subr.bf16.mxu0 %v6353_v0 }
 0xc03   :  { %v2584_v59 = vpop.f32.mrb[24].mxu0 }
 0xc04   :  { %v2588_v18 = vadd.f32 %v2584_v59, %v2501_v9  ;;  %v4082_v21 = vpop.f32.mrb[25].mxu0  ;;  %v2659_v9 = vld [vmem:[#allocation8 + $0x228] sm:$0xff] }
 0xc06   :  { %v2589_v38 = vmax.f32 %v2588_v18, 0.0 }
 0xc08   :  { %2735 = vmatmul.mubr.f32.vlgmr.msra.gmra.mrb[24].mxu1 %v2589_v38  ;;  %2806 = vmatmul.mubr.f32.vlgmr.msra.gmra.mrb[26].mxu0 %v2589_v38 }
 0xc09   :  { %4950 = vmatpush3.bf16.msra.mxu1 %v6192_v56  ;;  %4115 = vmatprep.mubr.msk.f32.mxu1 %vm5312_vm0, %v6352_v8 }
 0xc0a   :  { %4951 = vmatprep.subr.bf16.mxu1 %v6353_v0  ;;  %4974 = vmatpush3.bf16.msra.mxu0 %v6058_v33  ;;  %v6211_v33 = vpack.c.bf16 %v2629_v29, %v2624_v4 }
 0xc0b   :  { %4975 = vmatprep.subr.bf16.mxu0 %v6353_v0  ;;  %4150 = vmatprep.mubr.msk.f32.mxu0 %vm5312_vm0, %v6352_v8 }
 0xc0d   :  { %4953 = vmatpush3.bf16.msra.mxu1 %v6195_v35 }
 0xc0e   :  { %4954 = vmatprep.subr.bf16.mxu1 %v6353_v0  ;;  %4977 = vmatpush3.bf16.msra.mxu0 %v6062_v7  ;;  %v2644_v7 = vld [vmem:[#allocation8 + $0x1b0] sm:$0xff] }
 0xc0f   :  { %4978 = vmatprep.subr.bf16.mxu0 %v6353_v0  ;;  %v6223_v30 = vpack.c.bf16 %v2649_v40, %v2644_v7 }
 0xc11   :  { %4956 = vmatpush3.bf16.msra.mxu1 %v6205_v2 }
 0xc12   :  { %4957 = vmatprep.subr.bf16.mxu1 %v6353_v0  ;;  %4980 = vmatpush3.bf16.msra.mxu0 %v6066_v55  ;;  %v2654_v55 = vld [vmem:[#allocation8 + $0x200] sm:$0xff] }
 0xc13   :  { %4981 = vmatprep.subr.bf16.mxu0 %v6353_v0  ;;  %v6229_v42 = vpack.c.bf16 %v2659_v9, %v2654_v55 }
 0xc15   :  { %4959 = vmatpush3.bf16.msra.mxu1 %v6211_v33 }
 0xc16   :  { %4960 = vmatprep.subr.bf16.mxu1 %v6353_v0  ;;  %4983 = vmatpush3.bf16.msra.mxu0 %v6070_v5  ;;  %v2664_v5 = vld [vmem:[#allocation8 + $0x250] sm:$0xff] }
 0xc17   :  { %4984 = vmatprep.subr.bf16.mxu0 %v6353_v0  ;;  %v6235_v59 = vpack.c.bf16 %v2669_v49, %v2664_v5 }
 0xc19   :  { %4962 = vmatpush3.bf16.msra.mxu1 %v6217_v10 }
 0xc1a   :  { %4963 = vmatprep.subr.bf16.mxu1 %v6353_v0  ;;  %4986 = vmatpush3.bf16.msra.mxu0 %v6074_v39 }
 0xc1b   :  { %4987 = vmatprep.subr.bf16.mxu0 %v6353_v0 }
 0xc1d   :  { %4965 = vmatpush3.bf16.msra.mxu1 %v6223_v30 }
 0xc1e   :  { %4966 = vmatprep.subr.bf16.mxu1 %v6353_v0  ;;  %4989 = vmatpush3.bf16.msra.mxu0 %v6077_v26 }
 0xc1f   :  { %4990 = vmatprep.subr.bf16.mxu0 %v6353_v0 }
 0xc21   :  { %4968 = vmatpush3.bf16.msra.mxu1 %v6229_v42 }
 0xc22   :  { %4969 = vmatprep.subr.bf16.mxu1 %v6353_v0  ;;  %4992 = vmatpush3.bf16.msra.mxu0 %v6081_v43 }
 0xc23   :  { %4993 = vmatprep.subr.bf16.mxu0 %v6353_v0 }
 0xc25   :  { %4971 = vmatpush3.bf16.msra.mxu1 %v6235_v59 }
 0xc26   :  { %4995 = vmatpush3.bf16.msra.mxu0 %v6085_v1  ;;  %4997 = vmatprep.subr.bf16.mxu1 %v6089_v63 }
 0xc27   :  { %5029 = vmatprep.subr.bf16.mxu0 %v6093_v48 }
 0xc28   :  { %4116 = vmatmul.mubr.f32.vlgmr.msra.gmra.mrb[26].mxu1 %v2589_v38 }
 0xc29   :  { %4999 = vmatpush1.bf16.msra.mxu1 %v6091_v19  ;;  %3137 = vmatprep.mubr.f32.mxu1 %v6352_v8 }
 0xc2a   :  { %5001 = vmatprep.subr.bf16.mxu1 %v6098_v60 }
 0xc2d   :  { %5003 = vmatpush1.bf16.msra.mxu1 %v6100_v41 }
 0xc2e   :  { %5005 = vmatprep.subr.bf16.mxu1 %v6103_v13 }
 0xc31   :  { %5007 = vmatpush1.bf16.msra.mxu1 %v6106_v17 }
 0xc32   :  { %5009 = vmatprep.subr.bf16.mxu1 %v6109_v45 }
 0xc35   :  { %5011 = vmatpush1.bf16.msra.mxu1 %v6112_v57 }
 0xc36   :  { %5013 = vmatprep.subr.bf16.mxu1 %v6115_v15 }
 0xc39   :  { %5015 = vmatpush1.bf16.msra.mxu1 %v6118_v3 }
 0xc3a   :  { %5017 = vmatprep.subr.bf16.mxu1 %v6121_v20 }
 0xc3d   :  { %5019 = vmatpush1.bf16.msra.mxu1 %v6124_v12 }
 0xc3e   :  { %5021 = vmatprep.subr.bf16.mxu1 %v6127_v14 }
 0xc41   :  { %5023 = vmatpush1.bf16.msra.mxu1 %v6130_v58 }
 0xc42   :  { %5025 = vmatprep.subr.bf16.mxu1 %v6178_v28 }
 0xc45   :  { %5027 = vmatpush1.bf16.msra.mxu1 %v6180_v34 }
 0xc46   :  { %5060 = vmatprep.subr.bf16.mxu1 %v6353_v0 }
 0xcdb   :  { %v2736_v39 = vpop.f32.mrb[24].mxu1  ;;  %v2807_v26 = vpop.f32.mrb[26].mxu0 }
 0xcdc   :  { %v2882_v43 = vmax.f32 %v2736_v39, 0.0  ;;  %v3353_v1 = vmul.f32 -1.442695, %v2807_v26  ;;  %v2738_v63 = vpop.f32.mrb[25].mxu1  ;;  %v2809_v19 = vpop.f32.mrb[27].mxu0 }
 0xcdd   :  { %v2883_v48 = vmax.f32 %v2738_v63, 0.0  ;;  %v3352_v60 = vmul.f32 -1.442695, %v2809_v19 }
 0xcde   :  { %5145 = vpow2.f32 %v3353_v1 }
 0xcdf   :  { %v2884_v41 = vsub.f32 %v2882_v43, %v2883_v48  ;;  %5147 = vpow2.f32 %v3352_v60 }
 0xce8   :  { %v5146_v13 = vpop.eup %5145 }
 0xce9   :  { %v5148_v17 = vpop.eup %5147  ;;  %v2895_v45 = vadd.f32 1.0, %v5146_v13 }
 0xcea   :  { %v2888_v57 = vadd.f32 1.0, %v5148_v17 }
 0xceb   :  { %5149 = vrcp.f32 %v2895_v45 }
 0xcec   :  { %5151 = vrcp.f32 %v2888_v57 }
 0xcf5   :  { %v5150_v15 = vpop.eup %5149 }
 0xcf6   :  { %v5152_v3 = vpop.eup %5151  ;;  %v2898_v20 = vmul.f32 %v5150_v15, %v6137_v25 }
 0xcf7   :  { %v2891_v12 = vmul.f32 %v5152_v3, %v2884_v41 }
 0xcf9   :  { %v6262_v14 = vadd.f32 %v2898_v20, %v2891_v12 }
 0xcfb   :  { %v2878_v58 = vpop.f32.mrb[26].mxu1  ;;  %4151 = vmatmul.mubr.f32.vlgmr.msra.gmra.mrb[28].mxu0 %v6262_v14 }
 0xcfc   :  { %v2900_v28 = vmax.f32 %v2878_v58, 0.0  ;;  %v4117_v34 = vpop.f32.mrb[27].mxu1  ;;  %5031 = vmatpush1.bf16.msra.mxu0 %v6135_v16  ;;  %3208 = vmatprep.mubr.f32.mxu0 %v6352_v8  ;;  %v2904_v16 = vld [vmem:[#allocation2 + $0x38] sm:$0xff] }
 0xcfd   :  { %5033 = vmatprep.subr.bf16.mxu0 %v6139_v36 }
 0xcfe   :  { %2902 = vst [vmem:[#allocation10 + $0x30] sm:$0xff] %v2900_v28 }
 0xd00   :  { %5035 = vmatpush1.bf16.msra.mxu0 %v6143_v24 }
 0xd01   :  { %5037 = vmatprep.subr.bf16.mxu0 %v6147_v44 }
 0xd04   :  { %5039 = vmatpush1.bf16.msra.mxu0 %v6150_v31 }
 0xd05   :  { %5041 = vmatprep.subr.bf16.mxu0 %v6153_v11 }
 0xd08   :  { %5043 = vmatpush1.bf16.msra.mxu0 %v6156_v23 }
 0xd09   :  { %5045 = vmatprep.subr.bf16.mxu0 %v6159_v50 }
 0xd0c   :  { %5047 = vmatpush1.bf16.msra.mxu0 %v6162_v53 }
 0xd0d   :  { %5049 = vmatprep.subr.bf16.mxu0 %v6165_v52 }
 0xd10   :  { %5051 = vmatpush1.bf16.msra.mxu0 %v6168_v61 }
 0xd11   :  { %5053 = vmatprep.subr.bf16.mxu0 %v6171_v32 }
 0xd14   :  { %5055 = vmatpush1.bf16.msra.mxu0 %v6174_v27 }
 0xd15   :  { %5057 = vmatprep.subr.bf16.mxu0 %v6183_v6 }
 0xd18   :  { %5059 = vmatpush1.bf16.msra.mxu0 %v6185_v47 }
 0xdce   :  { %v2987_v25 = vpop.f32.mrb[28].mxu0 }
 0xdcf   :  { %v2991_v36 = vadd.f32 %v2987_v25, %v2904_v16  ;;  %v4152_v24 = vpop.f32.mrb[29].mxu0 }
 0xdd1   :  { %v2992_v44 = vmax.f32 %v2991_v36, 0.0 }
 0xdd3   :  { %3138 = vmatmul.mubr.f32.vlgmr.msra.gmra.mrb[28].mxu1 %v2992_v44  ;;  %3209 = vmatmul.mubr.f32.vlgmr.msra.gmra.mrb[30].mxu0 %v2992_v44 }
 0xdd4   :  { %5062 = vmatpush3.bf16.msra.mxu1 %v6192_v56  ;;  %4185 = vmatprep.mubr.msk.f32.mxu1 %vm5312_vm0, %v6352_v8 }
 0xdd5   :  { %5063 = vmatprep.subr.bf16.mxu1 %v6353_v0 }
 0xdd8   :  { %5065 = vmatpush3.bf16.msra.mxu1 %v6195_v35 }
 0xdd9   :  { %5066 = vmatprep.subr.bf16.mxu1 %v6353_v0 }
 0xddc   :  { %5068 = vmatpush3.bf16.msra.mxu1 %v6205_v2 }
 0xddd   :  { %5069 = vmatprep.subr.bf16.mxu1 %v6353_v0 }
 0xde0   :  { %5071 = vmatpush3.bf16.msra.mxu1 %v6211_v33 }
 0xde1   :  { %5072 = vmatprep.subr.bf16.mxu1 %v6353_v0 }
 0xde4   :  { %5074 = vmatpush3.bf16.msra.mxu1 %v6217_v10 }
 0xde5   :  { %5075 = vmatprep.subr.bf16.mxu1 %v6353_v0 }
 0xde8   :  { %5077 = vmatpush3.bf16.msra.mxu1 %v6223_v30 }
 0xde9   :  { %5078 = vmatprep.subr.bf16.mxu1 %v6353_v0 }
 0xdec   :  { %5080 = vmatpush3.bf16.msra.mxu1 %v6229_v42 }
 0xded   :  { %5081 = vmatprep.subr.bf16.mxu1 %v6353_v0 }
 0xdf0   :  { %5083 = vmatpush3.bf16.msra.mxu1 %v6235_v59 }
 0xdf3   :  { %4186 = vmatmul.mubr.f32.vlgmr.msra.gmra.mrb[30].mxu1 %v2992_v44 }
 0xea6   :  { %v3139_v8 = vpop.f32.mrb[28].mxu1  ;;  %v3210_v31 = vpop.f32.mrb[30].mxu0 }
 0xea7   :  { %v3285_v11 = vmax.f32 %v3139_v8, 0.0  ;;  %v3355_v23 = vmul.f32 -1.442695, %v3210_v31  ;;  %v3141_v50 = vpop.f32.mrb[29].mxu1  ;;  %v3212_v53 = vpop.f32.mrb[31].mxu0 }
 0xea8   :  { %v3286_v52 = vmax.f32 %v3141_v50, 0.0  ;;  %v3354_v61 = vmul.f32 -1.442695, %v3212_v53 }
 0xea9   :  { %5153 = vpow2.f32 %v3355_v23 }
 0xeaa   :  { %v3287_v32 = vsub.f32 %v3285_v11, %v3286_v52  ;;  %5155 = vpow2.f32 %v3354_v61 }
 0xeb3   :  { %v5154_v27 = vpop.eup %5153 }
 0xeb4   :  { %v5156_v6 = vpop.eup %5155  ;;  %v3298_v47 = vadd.f32 1.0, %v5154_v27 }
 0xeb5   :  { %v3291_v18 = vadd.f32 1.0, %v5156_v6 }
 0xeb6   :  { %5157 = vrcp.f32 %v3298_v47 }
 0xeb7   :  { %5159 = vrcp.f32 %v3291_v18 }
 0xec0   :  { %v5158_v0 = vpop.eup %5157 }
 0xec1   :  { %v5160_v21 = vpop.eup %5159  ;;  %v3301_v56 = vmul.f32 %v5158_v0, %v6262_v14 }
 0xec2   :  { %v3294_v38 = vmul.f32 %v5160_v21, %v3287_v32 }
 0xec4   :  { %v3302_v54 = vadd.f32 %v3301_v56, %v3294_v38 }
 0xec6   :  { %v3281_v62 = vpop.f32.mrb[30].mxu1  ;;  %3306 = vst [vmem:[#allocation11] sm:$0xff] %v3302_v54 }
 0xec7   :  { %v3303_v35 = vmax.f32 %v3281_v62, 0.0  ;;  %v4187_v51 = vpop.f32.mrb[31].mxu1 }
 0xec8   :  { %5260 = shalt.err (!%p5257_p8)
}
 0xec9   :  { %s5261_s27 = scalar_lea.hbm %s6339_s6, 128 }
 0xeca   :  { %p5262_p9 = scmp.ne.s32.totalorder %s6339_s6, %s5261_s27  ;;  %p5265_p10 = scmp.lt.u32.totalorder %s5261_s27, %s6339_s6 }
 0xecc   :  { %p5267_p11 = pnand %p5265_p10, %p5262_p9 }
 0xece   :  { %5270 = shalt.err (!%p5267_p11)
}
 0xecf   :  { %3328 = dma.vmem_to_hbm [thread:$0]  %s3326_s21, 128, %s6339_s6, [#allocation12]   ;;  %3305 = vst [vmem:[#allocation10 + $0x38] sm:$0xff] %v3303_v35 }
 0xed0   :  { %s5271_s8 = scalar_lea.vmem %s6299_s23, 1024  ;;  %p5276_p13 = scmp.lt.s32.totalorder %s6299_s23, %s6299_s23 }
 0xed1   :  { %p5272_p12 = scmp.ne.s32.totalorder %s6299_s23, %s5271_s8  ;;  %p5277_p0 = scmp.lt.s32.totalorder %s5271_s8, %s5271_s8 }
 0xed3   :  { %p5278_p1 = por %p5277_p0, %p5276_p13 }
 0xed5   :  { %p5279_p2 = pnand %p5278_p1, %p5272_p12 }
 0xed7   :  { %5282 = shalt.err (!%p5279_p2)
}
 0xed8   :  { %s5283_s11 = scalar_lea.hbm %s6338_s5, 1024 }
 0xed9   :  { %p5284_p3 = scmp.ne.s32.totalorder %s6338_s5, %s5283_s11  ;;  %p5287_p4 = scmp.lt.u32.totalorder %s5283_s11, %s6338_s5 }
 0xedb   :  { %p5289_p5 = pnand %p5287_p4, %p5284_p3 }
 0xedd   :  { %5292 = shalt.err (!%p5289_p5)
}
 0xede   :  { %3318 = dma.vmem_to_hbm [thread:$0]  %s6299_s23, 1024, %s6338_s5, [#allocation4], %s5305_s1, %s5305_s1, %s5306_s18  }
 0xedf   :  { %5299 = dma.done.wait [#allocation4], 1024  }
 0xee0   :  { %5300 = vsyncadd [#allocation4], 4294966272 }
 0xee1   :  { %5301 = dma.done.wait [#allocation12], 128  }
 0xee2   :  { %5302 = vsyncadd [#allocation12], 4294967168 }
 0xee3   :  { %3335 = vsyncpa [#allocation3], 1 }
 0xee4   :  { %3336 = vsyncpa [#allocation6], 1 }
 0xee5   :  { %3337 = vsyncpa [#allocation9], 1 }
 0xee6   :  { %3338 = vsyncpa [#allocation4], 1 }
 0xee7   :  { %3339 = vsyncpa [#allocation12], 1 }

</bundles_post_ra>
